<compile_context>
chip_gen: v7x
topology: tpu7x:2x2x1
jax: 0.10.0
libtpu: 0.0.40
codegen_flags: <defaults>
</compile_context>

<pallas_src>
import functools

import jax
import jax.numpy as jnp
from jax import lax
from jax.experimental import pallas as pl
from jax.experimental.pallas import tpu as pltpu


def _round_up(x, m):
    return ((x + m - 1) // m) * m


# ----------------------------------------------------------------------------
# Pallas kernel
# ----------------------------------------------------------------------------
def _conv_kernel(x_ref, w_ref, b_ref, o_ref, rhs_ref, *,
                 kt, dt, g, kk, kk_pad, n_frames, tt, s_pad, tap_offsets):
    """One grid step == one batch element x `tt` output time steps.

    x_ref   : (1, t_total, cin, s_in)   time-major flat-spatial input slab
    w_ref   : (n_out, kt*kk_pad)        kt folded into the contraction dim
    b_ref   : (n_out, 1) float32
    o_ref   : (1, tt, n_out, s_pad)     raw (un-grouped) conv output layout
    rhs_ref : (n_frames*kk_pad, s_pad)  per-frame im2col cache (VMEM scratch)
    """
    i = pl.program_id(1)
    frame_base = i * (tt * g)
    align = 16 if kk_pad % 16 == 0 else 8

    # -- stage 1: build the (kh*kw*cin) im2col fold ONCE per unique frame -----
    def build_frame(f, carry):
        xrow = x_ref[0, frame_base + f]                        # (cin, s_in)
        cols = [xrow[:, o:o + s_pad] for o in tap_offsets]     # static lane shifts
        if kk_pad > kk:
            cols.append(jnp.zeros((kk_pad - kk, s_pad), dtype=xrow.dtype))
        blk = cols[0] if len(cols) == 1 else jnp.concatenate(cols, axis=0)
        rhs_ref[pl.ds(pl.multiple_of(f * kk_pad, align), kk_pad), :] = blk
        return carry

    lax.fori_loop(0, n_frames, build_frame, 0, unroll=False)

    # -- stage 2: one MXU matmul per output step, K = kt*kh*kw*cin ------------
    w = w_ref[...]                 # hoisted: constant over the whole grid
    b = b_ref[...]                 # (n_out, 1) f32, broadcast over lanes

    def step(tt_loc, carry):
        if dt == 1:
            start = pl.multiple_of(tt_loc * (g * kk_pad), align)
            rhs = rhs_ref[pl.ds(start, kt * kk_pad), :]
        else:
            rhs = jnp.concatenate(
                [rhs_ref[pl.ds(pl.multiple_of((tt_loc * g + a * dt) * kk_pad,
                                              align), kk_pad), :]
                 for a in range(kt)], axis=0)
        acc = jnp.dot(w, rhs, preferred_element_type=jnp.float32) + b
        o_ref[0, tt_loc, :, :] = acc.astype(o_ref.dtype)       # full-tile store
        return carry

    lax.fori_loop(0, tt, step, 0, unroll=False)


# ----------------------------------------------------------------------------
# pallas_call builder
# ----------------------------------------------------------------------------
def _conv3d_grouped_pallas(x_k, w_k, b_k, *, kt, dt, g, kk, kk_pad, t_out,
                           s_pad, tap_offsets, out_dtype):
    B, t_total, cin, s_in = x_k.shape
    n_out, K = w_k.shape
    out_isz = jnp.dtype(out_dtype).itemsize
    x_isz = x_k.dtype.itemsize

    # -- output time steps per grid step: amortize per-step overhead, keep the
    #    per-step working set (out block + im2col scratch) well inside VMEM.
    tt = 1
    for d in range(1, t_out + 1):
        if t_out % d:
            continue
        n_frames_d = (d - 1) * g + (kt - 1) * dt + 1
        step_vmem = (2 * d * n_out * s_pad * out_isz            # out block (x2 buffers)
                     + n_frames_d * kk_pad * s_pad * x_isz)     # im2col scratch
        if d <= 32 and step_vmem <= (8 << 20):
            tt = d
    n_frames = (tt - 1) * g + (kt - 1) * dt + 1

    kernel = functools.partial(
        _conv_kernel, kt=kt, dt=dt, g=g, kk=kk, kk_pad=kk_pad,
        n_frames=n_frames, tt=tt, s_pad=s_pad, tap_offsets=tuple(tap_offsets))

    # -- VMEM budget + per-chip scoped-limit handling --------------------------
    x_slab = t_total * cin * s_in * x_isz
    w_bytes = w_k.size * w_k.dtype.itemsize
    b_bytes = b_k.size * b_k.dtype.itemsize
    out_blk = tt * n_out * s_pad * out_isz
    scratch_bytes = n_frames * kk_pad * s_pad * x_isz
    vmem_est = 2 * x_slab + w_bytes + b_bytes + 2 * out_blk + scratch_bytes + (2 << 20)

    cp_kwargs = dict(dimension_semantics=("parallel", "arbitrary"))
    if vmem_est > (14 << 20):          # smallest default scoped limit (v5e) is 16 MiB
        try:
            cap = int(getattr(pltpu.get_tpu_info(), "vmem_capacity_bytes",
                              64 << 20))
        except Exception:
            cap = 64 << 20             # conservative: v7x per-TensorCore physical VMEM
        cp_kwargs["vmem_limit_bytes"] = min(int(1.2 * vmem_est), int(0.9 * cap))

    flops = 2 * B * t_out * n_out * K * s_pad
    bytes_accessed = (B * x_slab + w_bytes + b_bytes
                      + B * t_out * n_out * s_pad * out_isz)
    cost = pl.CostEstimate(flops=flops, transcendentals=0,
                           bytes_accessed=bytes_accessed)

    # Whole per-batch time slab kept resident and re-used across the time tiles.
    # TODO(synk): replace with an overlapping, manually DMA'd time window
    #             (memory_space=pl.ANY) for large resolutions on v7x.
    x_spec = pl.BlockSpec((1, t_total, cin, s_in), lambda b, i: (b, 0, 0, 0))
    out_spec = pl.BlockSpec((1, tt, n_out, s_pad), lambda b, i: (b, i, 0, 0))

    def const_spec(shape, buffered):
        idx_map = lambda b, i: (0,) * len(shape)
        if buffered:
            try:
                # grid-invariant blocks: no point double-buffering them
                return pl.BlockSpec(shape, idx_map, pipeline_mode=pl.Buffered(1))
            except Exception:
                pass
        return pl.BlockSpec(shape, idx_map)

    def run(buffered):
        return pl.pallas_call(
            kernel,
            out_shape=jax.ShapeDtypeStruct((B, t_out, n_out, s_pad), out_dtype),
            grid_spec=pltpu.PrefetchScalarGridSpec(
                num_scalar_prefetch=0,
                grid=(B, t_out // tt),
                in_specs=[
                    x_spec,
                    const_spec(w_k.shape, buffered),
                    const_spec(b_k.shape, buffered),
                ],
                out_specs=out_spec,
                scratch_shapes=[pltpu.VMEM((n_frames * kk_pad, s_pad), x_k.dtype)],
            ),
            compiler_params=pltpu.CompilerParams(**cp_kwargs),
            cost_estimate=cost,
        )(x_k, w_k, b_k)

    has_buffered = hasattr(pl, "Buffered")
    if has_buffered:
        try:
            return run(True)
        except Exception:
            pass  # single-buffered constant operands unsupported -> default buffering
    return run(False)


# ----------------------------------------------------------------------------
# Forward wrapper == GroupCausal3DConvVAE.forward (eval mode)
# ----------------------------------------------------------------------------
def group_causal_3d_conv_vae_forward(x, weight, bias, *, out_channels,
                                     group_size, kernel, dilation=(1, 1, 1),
                                     gain=1, cache=None, training=False,
                                     compute_dtype=jnp.bfloat16):
    """x: (B, Cin, T, H, W) (PyTorch NCTHW).  Returns (out, cache)."""
    del gain  # TODO(synk): `gain` is accepted but never used, exactly like the PyTorch forward.
    kt, kh, kw = kernel                 # nn.Conv3d order: (kT, kH, kW)
    dt, dh, dw = dilation
    pad_h = dh * (kh // 2)
    pad_w = dw * (kw // 2)
    tp = kt + (kt - 1) * (dt - 1) - group_size          # time_padding_size
    assert tp >= 0, "group_size exceeds the dilated temporal kernel extent"
    B, cin, T, H, W = x.shape
    assert T % group_size == 0, "T must be a multiple of group_size"

    # spatial zero pad (module: F.pad, constant 0, last two dims)
    xp = jnp.pad(x, ((0, 0), (0, 0), (0, 0), (pad_h, pad_h), (pad_w, pad_w)))
    if cache is None:
        cache = xp[:, :, :tp]
    xcat = jnp.concatenate([cache, xp], axis=2)          # (B, Cin, T+tp, Hp, Wp)
    new_cache = None if training else xcat[:, :, xcat.shape[2] - tp:]

    Hp, Wp = H + 2 * pad_h, W + 2 * pad_w
    h_out = Hp - dh * (kh - 1)
    w_out = Wp - dw * (kw - 1)
    s_out = h_out * Wp                                   # flat output row (full padded width)
    s_pad = _round_up(s_out, 128)                        # lane-dense stores / full MXU tiles
    # flat-frame length so every (kh, kw) tap's s_pad-wide slice stays in range
    s_in = (kh - 1) * dh * Wp + (kw - 1) * dw + s_pad
    t_total = T + tp
    t_out = T // group_size
    n_out = out_channels * group_size
    kk = kh * kw * cin
    cdt = jnp.dtype(compute_dtype) if compute_dtype is not None else x.dtype
    kk_pad = _round_up(kk, 16 if cdt.itemsize == 2 else 8)   # tile-aligned frame blocks

    # time-major, channel-contraction, flat-spatial-lane layout for the kernel
    x_k = jnp.transpose(xcat, (0, 2, 1, 3, 4)).reshape(B, t_total, cin, Hp * Wp)
    if s_in > Hp * Wp:
        x_k = jnp.pad(x_k, ((0, 0), (0, 0), (0, 0), (0, s_in - Hp * Wp)))
    # (N, Cin, kt, kh, kw) -> (N, kt*kk_pad): kt folded into the contraction dim,
    # K ordered as (kt, kh, kw, cin) + zero pad rows to kk_pad per temporal tap.
    w_k = jnp.transpose(weight, (0, 2, 3, 4, 1)).reshape(n_out, kt, kk)
    if kk_pad > kk:
        w_k = jnp.pad(w_k, ((0, 0), (0, 0), (0, kk_pad - kk)))
    w_k = w_k.reshape(n_out, kt * kk_pad)
    b_k = bias.reshape(n_out, 1).astype(jnp.float32)
    if compute_dtype is not None:
        x_k = x_k.astype(compute_dtype)
        w_k = w_k.astype(compute_dtype)

    tap_offsets = [khi * dh * Wp + kwi * dw
                   for khi in range(kh) for kwi in range(kw)]

    conv = _conv3d_grouped_pallas(
        x_k, w_k, b_k, kt=kt, dt=dt, g=group_size, kk=kk, kk_pad=kk_pad,
        t_out=t_out, s_pad=s_pad, tap_offsets=tap_offsets, out_dtype=x.dtype)

    # conv: (B, t_out, n_out, s_pad) in raw conv layout.  Fold the
    # 'b (c g) t h w -> b c (t g) h w' rearrange and the horizontal-pad crop
    # into the single XLA copy pass that the crop needed anyway.
    conv = conv[..., :s_out].reshape(B, t_out, out_channels, group_size, h_out, Wp)
    out = jnp.transpose(conv, (0, 2, 1, 3, 4, 5)).reshape(
        B, out_channels, T, h_out, Wp)[..., :w_out]
    return out, new_cache


# ----------------------------------------------------------------------------
# Pure-JAX reference (sanity check only)
# ----------------------------------------------------------------------------
def _reference_forward(x, weight, bias, *, out_channels, group_size, kernel,
                       dilation, cache=None):
    kt, kh, kw = kernel
    dt, dh, dw = dilation
    pad_h = dh * (kh // 2)
    pad_w = dw * (kw // 2)
    tp = kt + (kt - 1) * (dt - 1) - group_size
    xp = jnp.pad(x, ((0, 0), (0, 0), (0, 0), (pad_h, pad_h), (pad_w, pad_w)))
    if cache is None:
        cache = xp[:, :, :tp]
    xcat = jnp.concatenate([cache, xp], axis=2)
    conv = lax.conv_general_dilated(
        xcat, weight, window_strides=(group_size, 1, 1), padding='VALID',
        rhs_dilation=dilation, dimension_numbers=('NCDHW', 'OIDHW', 'NCDHW'),
        precision=lax.Precision.HIGHEST)
    conv = conv + bias[None, :, None, None, None]
    B, n, t_o, h, w = conv.shape
    conv = conv.reshape(B, out_channels, group_size, t_o, h, w)
    conv = jnp.transpose(conv, (0, 1, 3, 2, 4, 5))
    return conv.reshape(B, out_channels, t_o * group_size, h, w)


def _bf16(a):
    return a.astype(jnp.bfloat16).astype(jnp.float32)


def _run_case(key, *, B, cin, T, H, W, out_channels, group_size, kernel,
              dilation, causal_init, with_cache):
    kt, kh, kw = kernel
    dt, dh, dw = dilation
    n_out = out_channels * group_size
    kx, kw_, kb, kc = jax.random.split(key, 4)
    x = jax.random.normal(kx, (B, cin, T, H, W), dtype=jnp.float32)
    fan_in = cin * kt * kh * kw
    bound = 1.0 / (fan_in ** 0.5)
    weight = jax.random.uniform(kw_, (n_out, cin, kt, kh, kw), minval=-bound,
                                maxval=bound, dtype=jnp.float32)
    if causal_init:
        # module __init__: zero all but the last `group_size` temporal taps
        weight = weight.at[:, :, :kt - group_size].set(0.0)
    bias = jax.random.uniform(kb, (n_out,), minval=-bound, maxval=bound,
                              dtype=jnp.float32)
    tp = kt + (kt - 1) * (dt - 1) - group_size
    Hp, Wp = H + 2 * dh * (kh // 2), W + 2 * dw * (kw // 2)
    cache = None
    if with_cache:
        cache = jax.random.normal(kc, (B, cin, tp, Hp, Wp), dtype=jnp.float32)

    out, new_cache = group_causal_3d_conv_vae_forward(
        x, weight, bias, out_channels=out_channels, group_size=group_size,
        kernel=kernel, dilation=dilation, cache=cache)
    out = jax.block_until_ready(out)
    jax.block_until_ready(new_cache)

    h_out = Hp - dh * (kh - 1)
    w_out = Wp - dw * (kw - 1)
    assert out.shape == (B, out_channels, T, h_out, w_out), out.shape
    assert new_cache.shape == (B, cin, tp, Hp, Wp), new_cache.shape

    # reference with identical bf16-quantized inputs (f32 accumulation in both)
    ref = _reference_forward(
        _bf16(x), _bf16(weight), bias, out_channels=out_channels,
        group_size=group_size, kernel=kernel, dilation=dilation,
        cache=None if cache is None else _bf16(cache))
    max_err = float(jnp.max(jnp.abs(out - ref)))
    if max_err > 2e-4:
        raise AssertionError(f"Pallas kernel mismatch vs reference: max_err={max_err}")
    return max_err


if __name__ == "__main__":
    key = jax.random.PRNGKey(0)
    k1, k2 = jax.random.split(key)

    # Case 1: module-faithful config (causal-group weight init, no cache).
    _run_case(k1, B=2, cin=4, T=8, H=16, W=16, out_channels=4, group_size=2,
              kernel=(4, 3, 3), dilation=(1, 1, 1),
              causal_init=True, with_cache=False)

    # Case 2: fully random weights + user-provided cache + temporal dilation,
    # exercising the leading-tap/cache indexing and the dt > 1 RHS path.
    _run_case(k2, B=1, cin=3, T=6, H=10, W=12, out_channels=3, group_size=2,
              kernel=(4, 3, 3), dilation=(2, 1, 1),
              causal_init=False, with_cache=True)

    print("KERNEL_OK")
</pallas_src>

<mosaic_0001>
module attributes {stable_mosaic.version = 11 : i64} {
  func.func @_conv_kernel(%arg0: i32, %arg1: i32, %arg2: memref<1x10x4x422xbf16, #tpu.memory_space<vmem>>, %arg3: memref<8x192xbf16, #tpu.memory_space<vmem>>, %arg4: memref<8x1xf32, #tpu.memory_space<vmem>>, %arg5: memref<1x4x8x384xf32, #tpu.memory_space<vmem>>, %arg6: memref<480x384xbf16, #tpu.memory_space<vmem>>) attributes {dimension_semantics = [#tpu.dimension_semantics<parallel>, #tpu.dimension_semantics<arbitrary>], iteration_bounds = array<i64: 2, 1>, scalar_prefetch = 0 : i64, scratch_operands = 1 : i64, tpu.core_type = #tpu.core_type<tc>, window_params = [{transform_indices = @transform_0, window_bounds = array<i64: 1, 10, 4, 422>}, {pipeline_mode = #tpu.pipeline_mode<synchronous>, transform_indices = @transform_1, window_bounds = array<i64: 8, 192>}, {pipeline_mode = #tpu.pipeline_mode<synchronous>, transform_indices = @transform_2, window_bounds = array<i64: 8, 1>}, {transform_indices = @transform_3, window_bounds = array<i64: 1, 4, 8, 384>}]} {
    %c8_i32 = arith.constant 8 : i32
    %0 = arith.muli %arg1, %c8_i32 : i32
    %c0_i32 = arith.constant 0 : i32
    %c10_i32 = arith.constant 10 : i32
    %1 = arith.addi %c0_i32, %c10_i32 : i32
    %c1_i32 = arith.constant 1 : i32
    scf.for %arg7 = %c0_i32 to %1 step %c1_i32  : i32 {
      %5 = arith.addi %0, %arg7 : i32
      %c0_7 = arith.constant 0 : index
      %6 = arith.index_cast %5 : i32 to index
      %c0_8 = arith.constant 0 : index
      %c0_9 = arith.constant 0 : index
      %7 = vector.load %arg2[%c0_7, %6, %c0_8, %c0_9] : memref<1x10x4x422xbf16, #tpu.memory_space<vmem>>, vector<1x1x4x422xbf16>
      %8 = vector.shape_cast %7 : vector<1x1x4x422xbf16> to vector<4x422xbf16>
      %9 = vector.extract_strided_slice %8 {offsets = [0, 0], sizes = [4, 384], strides = [1, 1]} : vector<4x422xbf16> to vector<4x384xbf16>
      %10 = vector.extract_strided_slice %8 {offsets = [0, 1], sizes = [4, 384], strides = [1, 1]} : vector<4x422xbf16> to vector<4x384xbf16>
      %11 = vector.extract_strided_slice %8 {offsets = [0, 2], sizes = [4, 384], strides = [1, 1]} : vector<4x422xbf16> to vector<4x384xbf16>
      %12 = vector.extract_strided_slice %8 {offsets = [0, 18], sizes = [4, 384], strides = [1, 1]} : vector<4x422xbf16> to vector<4x384xbf16>
      %13 = vector.extract_strided_slice %8 {offsets = [0, 19], sizes = [4, 384], strides = [1, 1]} : vector<4x422xbf16> to vector<4x384xbf16>
      %14 = vector.extract_strided_slice %8 {offsets = [0, 20], sizes = [4, 384], strides = [1, 1]} : vector<4x422xbf16> to vector<4x384xbf16>
      %15 = vector.extract_strided_slice %8 {offsets = [0, 36], sizes = [4, 384], strides = [1, 1]} : vector<4x422xbf16> to vector<4x384xbf16>
      %16 = vector.extract_strided_slice %8 {offsets = [0, 37], sizes = [4, 384], strides = [1, 1]} : vector<4x422xbf16> to vector<4x384xbf16>
      %17 = vector.extract_strided_slice %8 {offsets = [0, 38], sizes = [4, 384], strides = [1, 1]} : vector<4x422xbf16> to vector<4x384xbf16>
      %cst = arith.constant 0.000000e+00 : bf16
      %18 = vector.broadcast %cst : bf16 to vector<12x384xbf16>
      %19 = tpu.concatenate %9, %10, %11, %12, %13, %14, %15, %16, %17, %18 in 0 : vector<4x384xbf16>, vector<4x384xbf16>, vector<4x384xbf16>, vector<4x384xbf16>, vector<4x384xbf16>, vector<4x384xbf16>, vector<4x384xbf16>, vector<4x384xbf16>, vector<4x384xbf16>, vector<12x384xbf16> -> vector<48x384xbf16>
      %c48_i32 = arith.constant 48 : i32
      %20 = arith.muli %arg7, %c48_i32 : i32
      %21 = tpu.assume_multiple %20, 16 : i32
      %22 = arith.index_cast %21 : i32 to index
      %c0_10 = arith.constant 0 : index
      %23 = vector.load %arg6[%22, %c0_10] : memref<480x384xbf16, #tpu.memory_space<vmem>>, vector<48x384xbf16>
      tpu.vector_store %arg6[%22, %c0_10], %19 {strides = array<i32>} : memref<480x384xbf16, #tpu.memory_space<vmem>>, vector<48x384xbf16>,
    }
    %c10_i32_0 = arith.constant 10 : i32
    %c0 = arith.constant 0 : index
    %c0_1 = arith.constant 0 : index
    %2 = vector.load %arg3[%c0, %c0_1] : memref<8x192xbf16, #tpu.memory_space<vmem>>, vector<8x192xbf16>
    %c0_2 = arith.constant 0 : index
    %c0_3 = arith.constant 0 : index
    %3 = vector.load %arg4[%c0_2, %c0_3] : memref<8x1xf32, #tpu.memory_space<vmem>>, vector<8x1xf32>
    %c0_i32_4 = arith.constant 0 : i32
    %c4_i32 = arith.constant 4 : i32
    %4 = arith.addi %c0_i32_4, %c4_i32 : i32
    %c1_i32_5 = arith.constant 1 : i32
    scf.for %arg7 = %c0_i32_4 to %4 step %c1_i32_5  : i32 {
      %c96_i32 = arith.constant 96 : i32
      %5 = arith.muli %arg7, %c96_i32 : i32
      %6 = tpu.assume_multiple %5, 16 : i32
      %7 = arith.index_cast %6 : i32 to index
      %c0_7 = arith.constant 0 : index
      %8 = vector.load %arg6[%7, %c0_7] : memref<480x384xbf16, #tpu.memory_space<vmem>>, vector<192x384xbf16>
      %cst = arith.constant dense<0.000000e+00> : vector<8x384xf32>
      %9 = tpu.matmul %2, %8, %cst {dimension_numbers = #tpu.dot_dimension_numbers<[1], [0], [0], [1], [0, 0, 1, 1], [], []>} : vector<8x192xbf16>, vector<192x384xbf16>, vector<8x384xf32> -> vector<8x384xf32>
      %10 = vector.broadcast %3 : vector<8x1xf32> to vector<8x384xf32>
      %11 = arith.addf %9, %10 : vector<8x384xf32>
      %c0_8 = arith.constant 0 : index
      %12 = arith.index_cast %arg7 : i32 to index
      %c0_9 = arith.constant 0 : index
      %c0_10 = arith.constant 0 : index
      %13 = vector.load %arg5[%c0_8, %12, %c0_9, %c0_10] : memref<1x4x8x384xf32, #tpu.memory_space<vmem>>, vector<1x1x8x384xf32>
      %14 = vector.shape_cast %13 : vector<1x1x8x384xf32> to vector<8x384xf32>
      %15 = vector.shape_cast %11 : vector<8x384xf32> to vector<1x1x8x384xf32>
      tpu.vector_store %arg5[%c0_8, %12, %c0_9, %c0_10], %15 {strides = array<i32>} : memref<1x4x8x384xf32, #tpu.memory_space<vmem>>, vector<1x1x8x384xf32>,
    }
    %c4_i32_6 = arith.constant 4 : i32
    return
  }
  func.func @transform_0(%arg0: i32, %arg1: i32) -> (i32, i32, i32, i32) {
    %c0_i32 = arith.constant 0 : i32
    %c0_i32_0 = arith.constant 0 : i32
    %c0_i32_1 = arith.constant 0 : i32
    %c0_i32_2 = arith.constant 0 : i32
    return %arg0, %c0_i32, %c0_i32_0, %c0_i32_1 : i32, i32, i32, i32
  }
  func.func @transform_1(%arg0: i32, %arg1: i32) -> (i32, i32) {
    %c0_i32 = arith.constant 0 : i32
    %c0_i32_0 = arith.constant 0 : i32
    %c0_i32_1 = arith.constant 0 : i32
    return %c0_i32, %c0_i32_0 : i32, i32
  }
  func.func @transform_2(%arg0: i32, %arg1: i32) -> (i32, i32) {
    %c0_i32 = arith.constant 0 : i32
    %c0_i32_0 = arith.constant 0 : i32
    %c0_i32_1 = arith.constant 0 : i32
    return %c0_i32, %c0_i32_0 : i32, i32
  }
  func.func @transform_3(%arg0: i32, %arg1: i32) -> (i32, i32, i32, i32) {
    %c0_i32 = arith.constant 0 : i32
    %c0_i32_0 = arith.constant 0 : i32
    %c0_i32_1 = arith.constant 0 : i32
    return %arg0, %arg1, %c0_i32, %c0_i32_0 : i32, i32, i32, i32
  }
}

module attributes {stable_mosaic.version = 11 : i64} {
  func.func @_conv_kernel(%arg0: i32, %arg1: i32, %arg2: memref<1x10x4x422xbf16, #tpu.memory_space<vmem>>, %arg3: memref<8x192xbf16, #tpu.memory_space<vmem>>, %arg4: memref<8x1xf32, #tpu.memory_space<vmem>>, %arg5: memref<1x4x8x384xf32, #tpu.memory_space<vmem>>, %arg6: memref<480x384xbf16, #tpu.memory_space<vmem>>) attributes {dimension_semantics = [#tpu.dimension_semantics<parallel>, #tpu.dimension_semantics<arbitrary>], iteration_bounds = array<i64: 2, 1>, scalar_prefetch = 0 : i64, scratch_operands = 1 : i64, tpu.core_type = #tpu.core_type<tc>, window_params = [{transform_indices = @transform_0, window_bounds = array<i64: 1, 10, 4, 422>}, {pipeline_mode = #tpu.pipeline_mode<synchronous>, transform_indices = @transform_1, window_bounds = array<i64: 8, 192>}, {pipeline_mode = #tpu.pipeline_mode<synchronous>, transform_indices = @transform_2, window_bounds = array<i64: 8, 1>}, {transform_indices = @transform_3, window_bounds = array<i64: 1, 4, 8, 384>}]} {
    %c8_i32 = arith.constant 8 : i32
    %0 = arith.muli %arg1, %c8_i32 : i32
    %c0_i32 = arith.constant 0 : i32
    %c10_i32 = arith.constant 10 : i32
    %1 = arith.addi %c0_i32, %c10_i32 : i32
    %c1_i32 = arith.constant 1 : i32
    scf.for %arg7 = %c0_i32 to %1 step %c1_i32  : i32 {
      %5 = arith.addi %0, %arg7 : i32
      %c0_7 = arith.constant 0 : index
      %6 = arith.index_cast %5 : i32 to index
      %c0_8 = arith.constant 0 : index
      %c0_9 = arith.constant 0 : index
      %7 = vector.load %arg2[%c0_7, %6, %c0_8, %c0_9] : memref<1x10x4x422xbf16, #tpu.memory_space<vmem>>, vector<1x1x4x422xbf16>
      %8 = vector.shape_cast %7 : vector<1x1x4x422xbf16> to vector<4x422xbf16>
      %9 = vector.extract_strided_slice %8 {offsets = [0, 0], sizes = [4, 384], strides = [1, 1]} : vector<4x422xbf16> to vector<4x384xbf16>
      %10 = vector.extract_strided_slice %8 {offsets = [0, 1], sizes = [4, 384], strides = [1, 1]} : vector<4x422xbf16> to vector<4x384xbf16>
      %11 = vector.extract_strided_slice %8 {offsets = [0, 2], sizes = [4, 384], strides = [1, 1]} : vector<4x422xbf16> to vector<4x384xbf16>
      %12 = vector.extract_strided_slice %8 {offsets = [0, 18], sizes = [4, 384], strides = [1, 1]} : vector<4x422xbf16> to vector<4x384xbf16>
      %13 = vector.extract_strided_slice %8 {offsets = [0, 19], sizes = [4, 384], strides = [1, 1]} : vector<4x422xbf16> to vector<4x384xbf16>
      %14 = vector.extract_strided_slice %8 {offsets = [0, 20], sizes = [4, 384], strides = [1, 1]} : vector<4x422xbf16> to vector<4x384xbf16>
      %15 = vector.extract_strided_slice %8 {offsets = [0, 36], sizes = [4, 384], strides = [1, 1]} : vector<4x422xbf16> to vector<4x384xbf16>
      %16 = vector.extract_strided_slice %8 {offsets = [0, 37], sizes = [4, 384], strides = [1, 1]} : vector<4x422xbf16> to vector<4x384xbf16>
      %17 = vector.extract_strided_slice %8 {offsets = [0, 38], sizes = [4, 384], strides = [1, 1]} : vector<4x422xbf16> to vector<4x384xbf16>
      %cst = arith.constant 0.000000e+00 : bf16
      %18 = vector.broadcast %cst : bf16 to vector<12x384xbf16>
      %19 = tpu.concatenate %9, %10, %11, %12, %13, %14, %15, %16, %17, %18 in 0 : vector<4x384xbf16>, vector<4x384xbf16>, vector<4x384xbf16>, vector<4x384xbf16>, vector<4x384xbf16>, vector<4x384xbf16>, vector<4x384xbf16>, vector<4x384xbf16>, vector<4x384xbf16>, vector<12x384xbf16> -> vector<48x384xbf16>
      %c48_i32 = arith.constant 48 : i32
      %20 = arith.muli %arg7, %c48_i32 : i32
      %21 = tpu.assume_multiple %20, 16 : i32
      %22 = arith.index_cast %21 : i32 to index
      %c0_10 = arith.constant 0 : index
      %23 = vector.load %arg6[%22, %c0_10] : memref<480x384xbf16, #tpu.memory_space<vmem>>, vector<48x384xbf16>
      tpu.vector_store %arg6[%22, %c0_10], %19 {strides = array<i32>} : memref<480x384xbf16, #tpu.memory_space<vmem>>, vector<48x384xbf16>,
    }
    %c10_i32_0 = arith.constant 10 : i32
    %c0 = arith.constant 0 : index
    %c0_1 = arith.constant 0 : index
    %2 = vector.load %arg3[%c0, %c0_1] : memref<8x192xbf16, #tpu.memory_space<vmem>>, vector<8x192xbf16>
    %c0_2 = arith.constant 0 : index
    %c0_3 = arith.constant 0 : index
    %3 = vector.load %arg4[%c0_2, %c0_3] : memref<8x1xf32, #tpu.memory_space<vmem>>, vector<8x1xf32>
    %c0_i32_4 = arith.constant 0 : i32
    %c4_i32 = arith.constant 4 : i32
    %4 = arith.addi %c0_i32_4, %c4_i32 : i32
    %c1_i32_5 = arith.constant 1 : i32
    scf.for %arg7 = %c0_i32_4 to %4 step %c1_i32_5  : i32 {
      %c96_i32 = arith.constant 96 : i32
      %5 = arith.muli %arg7, %c96_i32 : i32
      %6 = tpu.assume_multiple %5, 16 : i32
      %7 = arith.index_cast %6 : i32 to index
      %c0_7 = arith.constant 0 : index
      %8 = vector.load %arg6[%7, %c0_7] : memref<480x384xbf16, #tpu.memory_space<vmem>>, vector<192x384xbf16>
      %cst = arith.constant dense<0.000000e+00> : vector<8x384xf32>
      %9 = tpu.matmul %2, %8, %cst {dimension_numbers = #tpu.dot_dimension_numbers<[1], [0], [0], [1], [0, 0, 1, 1], [], []>} : vector<8x192xbf16>, vector<192x384xbf16>, vector<8x384xf32> -> vector<8x384xf32>
      %10 = vector.broadcast %3 : vector<8x1xf32> to vector<8x384xf32>
      %11 = arith.addf %9, %10 : vector<8x384xf32>
      %c0_8 = arith.constant 0 : index
      %12 = arith.index_cast %arg7 : i32 to index
      %c0_9 = arith.constant 0 : index
      %c0_10 = arith.constant 0 : index
      %13 = vector.load %arg5[%c0_8, %12, %c0_9, %c0_10] : memref<1x4x8x384xf32, #tpu.memory_space<vmem>>, vector<1x1x8x384xf32>
      %14 = vector.shape_cast %13 : vector<1x1x8x384xf32> to vector<8x384xf32>
      %15 = vector.shape_cast %11 : vector<8x384xf32> to vector<1x1x8x384xf32>
      tpu.vector_store %arg5[%c0_8, %12, %c0_9, %c0_10], %15 {strides = array<i32>} : memref<1x4x8x384xf32, #tpu.memory_space<vmem>>, vector<1x1x8x384xf32>,
    }
    %c4_i32_6 = arith.constant 4 : i32
    return
  }
  func.func @transform_0(%arg0: i32, %arg1: i32) -> (i32, i32, i32, i32) {
    %c0_i32 = arith.constant 0 : i32
    %c0_i32_0 = arith.constant 0 : i32
    %c0_i32_1 = arith.constant 0 : i32
    %c0_i32_2 = arith.constant 0 : i32
    return %arg0, %c0_i32, %c0_i32_0, %c0_i32_1 : i32, i32, i32, i32
  }
  func.func @transform_1(%arg0: i32, %arg1: i32) -> (i32, i32) {
    %c0_i32 = arith.constant 0 : i32
    %c0_i32_0 = arith.constant 0 : i32
    %c0_i32_1 = arith.constant 0 : i32
    return %c0_i32, %c0_i32_0 : i32, i32
  }
  func.func @transform_2(%arg0: i32, %arg1: i32) -> (i32, i32) {
    %c0_i32 = arith.constant 0 : i32
    %c0_i32_0 = arith.constant 0 : i32
    %c0_i32_1 = arith.constant 0 : i32
    return %c0_i32, %c0_i32_0 : i32, i32
  }
  func.func @transform_3(%arg0: i32, %arg1: i32) -> (i32, i32, i32, i32) {
    %c0_i32 = arith.constant 0 : i32
    %c0_i32_0 = arith.constant 0 : i32
    %c0_i32_1 = arith.constant 0 : i32
    return %arg0, %arg1, %c0_i32, %c0_i32_0 : i32, i32, i32, i32
  }
}

</mosaic_0001>

<bundles_post_ra>
// kernel: tpu_custom_call.1
= control target key start
LH: loop header
LB: loop body
LE: loop exit
PB: predicated region body
PF: predicated region fallthrough
CT: control target
= control target key end

     0   :  { %8 = vsyncpa [#allocation4], 0  ;;  %s1343_s0 = inlined_call_operand.hbm [shape: bf16[2,10,4,422], index: 0, kind: input, shape index: {}]   ;;  %s1344_s1 = inlined_call_operand.vmem [shape: bf16[8,192], index: 1, kind: input, shape index: {}]   ;;  %s1345_s2 = inlined_call_operand.vmem [shape: f32[8,1], index: 2, kind: input, shape index: {}]   ;;  %s1346_s3 = inlined_call_operand.hbm [shape: f32[2,4,8,384], index: 3, kind: output, shape index: {}]  }
   0x1   :  { %10 = vsyncpa [#allocation4 + $0x1], 0 }
   0x2   :  { %11 = vsyncpa [#allocation5], 0 }
   0x3   :  { %13 = vsyncpa [#allocation5 + $0x1], 0  ;;  %s980_s12 = smov 0   ;;  %s982_s13 = smov 0  }
   0x4   :  { %s984_s14 = smov 0   ;;  %s986_s15 = smov 0  }
   0x5   :  { %s988_s16 = smov 0   ;;  %s990_s17 = smov 0  }
   0x6 LB: > { %s692_s18 = sadd.s32 4294967295, %s934_s17   ;;  %s693_s19 = sadd.s32 4294967294, %s934_s17   ;;  %s934_s17 = sphi %s990_s17, %s19_s17   ;;  %s930_s16 = sphi %s988_s16, %s1361_s16   ;;  %s926_s15 = sphi %s986_s15, %s1360_s15   ;;  %s922_s14 = sphi %s984_s14, %s1359_s14   ;;  %s918_s13 = sphi %s982_s13, %s1358_s13   ;;  %s914_s12 = sphi %s980_s12, %s1357_s12  }
   0x7   : > { %s31_s20 = sadd.s32 1, %s930_s16  ;;  %s38_s21 = sadd.s32 1, %s922_s14 }
   0x8   : > { %p33_p0 = scmp.ge.s32.totalorder %s31_s20, 2  ;;  %p45_p1 = scmp.ne.s32.totalorder %s922_s14, %s918_s13 }
   0x9   : > { %p46_p2 = scmp.eq.s32.totalorder %s934_s17, 0  ;;  %p51_p3 = scmp.ne.s32.totalorder %s918_s13, %s914_s12 }
   0xa   : > { %s1363_s20 = smov (%p33_p0, %s31_s20), 0  ;;  %p52_p5 = scmp.eq.s32.totalorder %s692_s18, 0 }
   0xb   : > { %p1021_p4 = por %p46_p2, %p45_p1  ;;  %s35_s23 = ssub.s32 %s930_s16, %s1363_s20 }
   0xc   : > { %p119_p6 = scmp.eq.s32.totalorder %s692_s18, 1  ;;  %p36_p7 = scmp.eq.s32.totalorder %s35_s23, 0 }
   0xd   : > { %p1027_p8 = por %p52_p5, %p51_p3  ;;  %p125_p10 = scmp.eq.s32.totalorder %s693_s19, 1 }
   0xe   : > { %p1031_p9 = por %p119_p6, %p45_p1  ;;  %p731_p13 = scmp.lt.s32.totalorder %s934_s17, 2 }
   0xf   : > { %s1036_s26 = scalar_select %p36_p7, %s922_s14, %s38_s21  }
  0x10   : > { %s1350_s25 = scalar_select %p1031_p9, 1, 0 }
  0x11   : > { %p1038_p11 = por %p125_p10, %p51_p3  ;;  %s151_s28 = sand.u32 1, %s922_s14  }
  0x12   : > { %s714_s29 = smul.u32 80, %s151_s28  ;;  %p1048_p0 = pnand %p731_p13, %p1021_p4 }
  0x13   : > { %s1351_s27 = scalar_select %p1038_p11, 1, 0 }
  0x14   : > { %s715_s30 = smul.u32 1280, %s930_s16  ;;  %s155_s8 = scalar_lea.vmem [#allocation3], %s714_s29 }
  0x15   : > { %s162_s9 = sshll.u32 %s155_s8, 4  ;;  %s1060_s10 = scalar_lea.sflag [#allocation4], %s151_s28  ;;  %s1057_s9 = int_to_ptr.vmem [resolvable:$true] %s162_s9 }
  0x16   : > { %s1055_s7 = scalar_lea.hbm %s1343_s0, %s715_s30  ;;  %p816_p3 = pneg %p1048_p0 }
  0x17   : > { %s814_s11 = scalar_lea.hbm %s1055_s7, 1280  ;;  %s819_s21 = scalar_lea.hbm %s1343_s0, 2560 }
  0x18   : > { %p815_p2 = scmp.ne.s32.totalorder %s1055_s7, %s814_s11  ;;  %p820_p6 = scmp.lt.u32.totalorder %s1055_s7, %s1343_s0 }
  0x19   : > { %p821_p7 = scmp.lt.u32.totalorder %s819_s21, %s814_s11  ;;  %p823_p13 = scmp.lt.u32.totalorder %s814_s11, %s1055_s7 }
  0x1a   : > { %p817_p4 = pnand %p816_p3, %p815_p2 }
  0x1b   : > { %p822_p10 = por %p821_p7, %p820_p6 }
  0x1c   : > { %p818_p5 = pneg %p817_p4 }
  0x1d   : > { %p824_p12 = por %p823_p13, %p822_p10 }
  0x1f   : > { %p825_p1 = pnand %p824_p12, %p818_p5 }
  0x21   : > { %828 = shalt.err (!%p825_p1)
}
  0x22   : > { %s829_s28 = scalar_lea.vmem %s1057_s9, 1280  ;;  %s944_s29 = smov [#allocation3]  }
  0x23   : > { %p830_p2 = scmp.ne.s32.totalorder %s1057_s9, %s829_s28  ;;  %s834_s30 = sshll.u32 %s944_s29, 4  ;;  %s835_s30 = int_to_ptr.vmem [resolvable:$false] %s834_s30 }
  0x24   : > { %s836_s5 = scalar_lea.vmem %s835_s30, 2560  ;;  %p837_p9 = scmp.lt.s32.totalorder %s1057_s9, %s835_s30 }
  0x25   : > { %p832_p4 = pnand %p830_p2, %p816_p3  ;;  %p838_p6 = scmp.lt.s32.totalorder %s836_s5, %s829_s28 }
  0x27   : > { %p833_p11 = pneg %p832_p4  ;;  %p839_p7 = por %p838_p6, %p837_p9 }
  0x29   : > { %p840_p10 = pnand %p839_p7, %p833_p11 }
  0x2b   : > { %843 = shalt.err (!%p840_p10)
}
  0x2c   : > { %s945_s6 = smov 128   ;;  %s946_s8 = smov 8  }
  0x2d   : > { %726 = dma.hbm_to_vmem [thread:$0]  (!%p1048_p0), %s1055_s7, 1280, %s1057_s9, %s1060_s10, %s945_s6, %s945_s6, %s946_s8  }
  0x2e   : > { %p170_p12 = scmp.lt.s32.totalorder %s934_s17, 3  ;;  %p1353_p1 = scmp.ge.s32.totalorder %s934_s17, 1 }
  0x30   : > { %p171_p3 = pnand %p1353_p1, %p170_p12 }
  0x31   : > { %s1092_s11 = sand.u32 (!%p171_p3), 1, %s918_s13  }
  0x32   : > { %174 = sbr.rel (%p171_p3) target bundleno = 533 (0x215), region = 32  ;;  %s177_s19 = scalar_lea.sflag (!%p171_p3), [#allocation4], %s1092_s11 }
  0x33   : > { %s716_s18 = smul.u32 (!%p171_p3), 80, %s1092_s11 }
  0x35   : > { %s1096_s21 = scalar_lea.vmem (!%p171_p3), [#allocation3], %s716_s18 }
  0x39   : > { %905 = dma.done.wait (%p1027_p8), %s177_s19, 1280  }
  0x3a   : > { %907 = vsyncadd (%p1027_p8), %s177_s19, 4294966016  ;;  %s717_s4 = smul.u32 96, %s1092_s11  ;;  %s1105_s9 = smov 0  }
  0x3c   : > { %s1103_s7 = scalar_lea.vmem [#allocation6], %s717_s4 }
  0x3d LB: >> { %v222_v0 = vlaneseq  ;;  %v947_v1 = vmov 1983009808   ;;  %s710_s10 = sshll.u32 %s938_s9, 3  ;;  %s948_s22 = smov 127   ;;  %vm265_vm0 = vcmask 1031168   ;;  %vm251_vm1 = vcmask 1039360   ;;  %s938_s9 = sphi %s1105_s9, %s211_s9  }
  0x3e   : >> { %v220_v2 = vunpack.c.l.s4 %v947_v1  ;;  %s215_s24 = scalar_lea.vmem %s1096_s21, %s710_s10 [#allocation3]  ;;  %s949_s23 = smov 109   ;;  %vm353_vm2 = vcmask 1043456   ;;  %vm278_vm3 = vcmask 900096   ;;  %vm343_vm4 = vcmask 1041408  }
  0x3f   : >> { %v223_v3 = vshrl.u32 %v222_v0, 7  ;;  %v216_v5 = vld [vmem:[%s215_s24] sm:$0xff]  ;;  %s950_s28 = smov 108   ;;  %s951_s29 = smov 126   ;;  %vm360_vm5 = vcmask 1045504   ;;  %vm303_vm6 = vcmask 883712  }
  0x40   : >> { %v221_v4 = vunpack.c.0.s8 %v220_v2  ;;  %v234_v7 = vcombine.low %v216_v5, %v216_v5  ;;  %v218_v10 = vcombine.high %v216_v5, %v216_v5  ;;  %s952_s30 = smov 92   ;;  %s953_s5 = smov 110   ;;  %vm315_vm7 = vcmask 752640  }
  0x41   : >> { %s954_s6 = smov 91   ;;  %s955_s8 = smov 90   ;;  %vm291_vm8 = vcmask 891904   ;;  %vm327_vm9 = vcmask 744448   ;;  %vm339_vm10 = vcmask 736256  }
  0x42   : >> { %v224_v6 = vsub.s32 %v221_v4, %v223_v3  ;;  %s404_s18 = smul.u32 48, %s938_s9  ;;  %s211_s9 = sadd.s32 1, %s938_s9  }
  0x43   : >> { %p208_p8 = scmp.ge.s32.totalorder %s211_s9, 10  }
  0x44   : >> { %v241_v8 = vrot.slane %v234_v7, %v224_v6  ;;  %v1112_v9 = vrot.slane %v216_v5, %v224_v6  ;;  %v1121_v13 = vrot.slane %v218_v10, %v224_v6  ;;  %s405_s19 = sshra.s32 %s404_s18, 4 }
  0x45   : >> { %s711_s4 = smul.u32 24, %s405_s19 }
  0x46   : >> { %243 = vrot.lane.b32.xlu0 %v241_v8, %s948_s22  ;;  %247 = vrot.lane.b32.xlu1 %v1112_v9, %s948_s22  ;;  %v1117_v11 = vcombine.high %v1112_v9, %v1112_v9  ;;  %v242_v12 = vcombine.high %v241_v8, %v241_v8  ;;  %v282_v14 = vcombine.high %v1121_v13, %v1121_v13 }
  0x47   : >> { %v255_v15 = vcombine.low %v1112_v9, %v1112_v9  ;;  %v256_v16 = vcombine.low %v1121_v13, %v1121_v13  ;;  %v269_v17 = vcombine.low %v241_v8, %v241_v8  ;;  %s1157_s10 = scalar_lea.vmem [#allocation2], %s711_s4 }
  0x4a   : >> { %283 = vrot.lane.b32.xlu0 %v1112_v9, %s949_s23  ;;  %249 = vrot.lane.b32.xlu1 %v1117_v11, %s948_s22 }
  0x4e   : >> { %245 = vrot.lane.b32.xlu0 %v242_v12, %s948_s22  ;;  %285 = vrot.lane.b32.xlu1 %v1117_v11, %s949_s23 }
  0x52   : >> { %287 = vrot.lane.b32.xlu0 %v1121_v13, %s949_s23  ;;  %289 = vrot.lane.b32.xlu1 %v282_v14, %s949_s23 }
  0x56   : >> { %295 = vrot.lane.b32.xlu0 %v241_v8, %s950_s28  ;;  %297 = vrot.lane.b32.xlu1 %v242_v12, %s950_s28 }
  0x5a   : >> { %299 = vrot.lane.b32.xlu0 %v1112_v9, %s950_s28  ;;  %301 = vrot.lane.b32.xlu1 %v1117_v11, %s950_s28 }
  0x5e   : >> { %257 = vrot.lane.b32.xlu0 %v255_v15, %s951_s29  ;;  %259 = vrot.lane.b32.xlu1 %v1112_v9, %s951_s29 }
  0x62   : >> { %263 = vrot.lane.b32.xlu1 %v1121_v13, %s951_s29  ;;  %261 = vrot.lane.b32.xlu0 %v256_v16, %s951_s29  ;;  %s1220_s29 = smov (%p208_p8), 0  }
  0x66   : >> { %309 = vrot.lane.b32.xlu1 %v1112_v9, %s952_s30  ;;  %307 = vrot.lane.b32.xlu0 %v255_v15, %s952_s30 }
  0x6a   : >> { %313 = vrot.lane.b32.xlu1 %v1121_v13, %s952_s30  ;;  %311 = vrot.lane.b32.xlu0 %v256_v16, %s952_s30 }
  0x6e   : >> { %272 = vrot.lane.b32.xlu1 %v241_v8, %s953_s5  ;;  %270 = vrot.lane.b32.xlu0 %v269_v17, %s953_s5 }
  0x72   : >> { %276 = vrot.lane.b32.xlu1 %v1112_v9, %s953_s5  ;;  %274 = vrot.lane.b32.xlu0 %v255_v15, %s953_s5 }
  0x76   : >> { %321 = vrot.lane.b32.xlu1 %v241_v8, %s954_s6  ;;  %319 = vrot.lane.b32.xlu0 %v269_v17, %s954_s6 }
  0x7a   : >> { %325 = vrot.lane.b32.xlu1 %v1112_v9, %s954_s6  ;;  %323 = vrot.lane.b32.xlu0 %v255_v15, %s954_s6 }
  0x7e   : >> { %333 = vrot.lane.b32.xlu1 %v1117_v11, %s955_s8  ;;  %331 = vrot.lane.b32.xlu0 %v1112_v9, %s955_s8 }
  0x82   : >> { %337 = vrot.lane.b32.xlu1 %v282_v14, %s955_s8  ;;  %335 = vrot.lane.b32.xlu0 %v1121_v13, %s955_s8 }
  0xb8   : >> { %v244_v18 = vpop.permute.xlu0 %243  ;;  %v248_v19 = vpop.permute.xlu1 %247 }
  0xbc   : >> { %v284_v20 = vpop.permute.xlu0 %283  ;;  %v250_v21 = vpop.permute.xlu1 %249 }
  0xbd   : >> { %v254_v43 = vsel %vm251_vm1, %v248_v19, %v250_v21 }
  0xbe   : >> { %v352_v50 = vsel %vm343_vm4, %v1121_v13, %v254_v43 }
  0xc0   : >> { %v246_v22 = vpop.permute.xlu0 %245  ;;  %v1142_v23 = vpop.permute.xlu1 %285 }
  0xc1   : >> { %v252_v38 = vsel %vm251_vm1, %v244_v18, %v246_v22  ;;  %v253_v44 = vsel %vm251_vm1, %v246_v22, %v248_v19  ;;  %v292_v62 = vsel %vm291_vm8, %v284_v20, %v1142_v23 }
  0xc2   : >> { %v346_v40 = vsel %vm343_vm4, %v1112_v9, %v252_v38  ;;  %v349_v51 = vsel %vm343_vm4, %v1117_v11, %v253_v44 }
  0xc4   : >> { %v1144_v24 = vpop.permute.xlu0 %287  ;;  %v1146_v25 = vpop.permute.xlu1 %289 }
  0xc5   : >> { %v293_v9 = vsel %vm291_vm8, %v1142_v23, %v1144_v24  ;;  %v294_v10 = vsel %vm291_vm8, %v1144_v24, %v1146_v25 }
  0xc8   : >> { %v296_v26 = vpop.permute.xlu0 %295  ;;  %v298_v27 = vpop.permute.xlu1 %297 }
  0xc9   : >> { %v304_v52 = vsel %vm303_vm6, %v296_v26, %v298_v27 }
  0xca   : >> { %v372_v63 = vsel %vm343_vm4, %v292_v62, %v304_v52 }
  0xcc   : >> { %v300_v28 = vpop.permute.xlu0 %299  ;;  %v302_v29 = vpop.permute.xlu1 %301 }
  0xcd   : >> { %v305_v2 = vsel %vm303_vm6, %v298_v27, %v300_v28  ;;  %v306_v3 = vsel %vm303_vm6, %v300_v28, %v302_v29 }
  0xce   : >> { %v375_v11 = vsel %vm343_vm4, %v293_v9, %v305_v2  ;;  %v378_v12 = vsel %vm343_vm4, %v294_v10, %v306_v3 }
  0xd0   : >> { %v258_v30 = vpop.permute.xlu0 %257  ;;  %v260_v31 = vpop.permute.xlu1 %259 }
  0xd1   : >> { %v266_v39 = vsel %vm265_vm0, %v258_v30, %v260_v31 }
  0xd2   : >> { %v355_v45 = vsel %vm353_vm2, %v346_v40, %v266_v39 }
  0xd4   : >> { %v264_v32 = vpop.permute.xlu1 %263  ;;  %v262_v33 = vpop.permute.xlu0 %261 }
  0xd5   : >> { %v267_v47 = vsel %vm265_vm0, %v260_v31, %v262_v33  ;;  %v268_v48 = vsel %vm265_vm0, %v262_v33, %v264_v32  ;;  %v1213_v31 = vld [vmem:[%s1344_s1] sm:$0xff] (%p208_p8) }
  0xd6   : >> { %v357_v55 = vsel %vm353_vm2, %v349_v51, %v267_v47  ;;  %v359_v56 = vsel %vm353_vm2, %v352_v50, %v268_v48  ;;  %v1218_v32 = vld [vmem:[%s1345_s2] sm:$0xff] (%p208_p8) }
  0xd8   : >> { %v310_v34 = vpop.permute.xlu1 %309  ;;  %v308_v35 = vpop.permute.xlu0 %307 }
  0xd9   : >> { %v316_v59 = vsel %vm315_vm7, %v308_v35, %v310_v34 }
  0xda   : >> { %v380_v4 = vsel %vm353_vm2, %v372_v63, %v316_v59 }
  0xdc   : >> { %v314_v36 = vpop.permute.xlu1 %313  ;;  %v312_v37 = vpop.permute.xlu0 %311 }
  0xdd   : >> { %v317_v6 = vsel %vm315_vm7, %v310_v34, %v312_v37  ;;  %v318_v7 = vsel %vm315_vm7, %v312_v37, %v314_v36 }
  0xde   : >> { %v382_v15 = vsel %vm353_vm2, %v375_v11, %v317_v6  ;;  %v384_v16 = vsel %vm353_vm2, %v378_v12, %v318_v7 }
  0xe0   : >> { %v273_v41 = vpop.permute.xlu1 %272  ;;  %v271_v42 = vpop.permute.xlu0 %270 }
  0xe1   : >> { %v279_v46 = vsel %vm278_vm3, %v271_v42, %v273_v41 }
  0xe2   : >> { %v362_v49 = vsel %vm360_vm5, %v355_v45, %v279_v46 }
  0xe3   : >> { %410 = vst [vmem:[%s1157_s10] sm:$0xff] %v362_v49 }
  0xe4   : >> { %v277_v53 = vpop.permute.xlu1 %276  ;;  %v275_v54 = vpop.permute.xlu0 %274 }
  0xe5   : >> { %v280_v57 = vsel %vm278_vm3, %v273_v41, %v275_v54  ;;  %v281_v58 = vsel %vm278_vm3, %v275_v54, %v277_v53 }
  0xe6   : >> { %v365_v60 = vsel %vm360_vm5, %v357_v55, %v280_v57  ;;  %v368_v61 = vsel %vm360_vm5, %v359_v56, %v281_v58 }
  0xe7   : >> { %411 = vst [vmem:[%s1157_s10 + $0x8] sm:$0xff] %v365_v60  ;;  %412 = vst [vmem:[%s1157_s10 + $0x10] sm:$0xff] %v368_v61 }
  0xe8   : >> { %v322_v0 = vpop.permute.xlu1 %321  ;;  %v320_v1 = vpop.permute.xlu0 %319 }
  0xe9   : >> { %v328_v5 = vsel %vm327_vm9, %v320_v1, %v322_v0 }
  0xea   : >> { %v386_v8 = vsel %vm360_vm5, %v380_v4, %v328_v5 }
  0xeb   : >> { %413 = vst [vmem:[%s1157_s10 + $0x18] sm:$0xff] %v386_v8 }
  0xec   : >> { %v326_v13 = vpop.permute.xlu1 %325  ;;  %v324_v14 = vpop.permute.xlu0 %323 }
  0xed   : >> { %v329_v17 = vsel %vm327_vm9, %v322_v0, %v324_v14  ;;  %v330_v18 = vsel %vm327_vm9, %v324_v14, %v326_v13 }
  0xee   : >> { %v389_v19 = vsel %vm360_vm5, %v382_v15, %v329_v17  ;;  %v392_v20 = vsel %vm360_vm5, %v384_v16, %v330_v18 }
  0xef   : >> { %414 = vst [vmem:[%s1157_s10 + $0x20] sm:$0xff] %v389_v19  ;;  %415 = vst [vmem:[%s1157_s10 + $0x28] sm:$0xff] %v392_v20 }
  0xf0   : >> { %v334_v21 = vpop.permute.xlu1 %333  ;;  %v332_v22 = vpop.permute.xlu0 %331 }
  0xf1   : >> { %v340_v23 = vsel %vm339_vm10, %v332_v22, %v334_v21  ;;  %210 = sbr.rel (!%p208_p8) target bundleno = 61 (0x3d), region = 95 }
  0xf2   : >> { %v396_v24 = vsel %vm343_vm4, %v340_v23, 0 }
  0xf3   : >> { %416 = vst [vmem:[%s1157_s10 + $0x30] sm:$0xff] %v396_v24 }
  0xf4   : >> { %v338_v25 = vpop.permute.xlu1 %337  ;;  %v336_v26 = vpop.permute.xlu0 %335 }
  0xf5   : >> { %v341_v27 = vsel %vm339_vm10, %v334_v21, %v336_v26  ;;  %v342_v28 = vsel %vm339_vm10, %v336_v26, %v338_v25 }
  0xf6   : >> { %v399_v29 = vsel %vm343_vm4, %v341_v27, 0  ;;  %v402_v30 = vsel %vm343_vm4, %v342_v28, 0 }
  0xf7   : >> { %417 = vst [vmem:[%s1157_s10 + $0x38] sm:$0xff] %v399_v29  ;;  %418 = vst [vmem:[%s1157_s10 + $0x40] sm:$0xff] %v402_v30 }
  0xf8 LB: >> { %v703_v33 = vcombine.high %v1213_v31, %v1213_v31  ;;  %vm480_vm11 = vcmask 523264   ;;  %v956_v34 = vmov 0   ;;  %s427_s21 = smul.u32 96, %s942_s29  ;;  %v702_v7 = vcombine.low %v1213_v31, %v1213_v31  ;;  %s942_s29 = sphi %s1220_s29, %s426_s29  }
  0xf9   : >> { %525 = vmatprep.subr.bf16.mxu1 %v956_v34  ;;  %813 = vset.pattern.permute.xlu0 %v956_v34  ;;  %s713_s6 = smul.u32 24, %s942_s29  ;;  %s426_s29 = sadd.s32 1, %s942_s29  }
  0xfa   : >> { %705 = vmatprep.mubr.msk.bf16.mxu1 %vm480_vm11, %v703_v33  ;;  %704 = vmatprep.mubr.msk.bf16.mxu0 %vm480_vm11, %v703_v33  ;;  %s428_s9 = sshra.s32 %s427_s21, 4  ;;  %p423_p9 = scmp.ge.s32.totalorder %s426_s29, 4  }
  0xfb   : >> { %471 = vperm.xlu0 %813, %v1218_v32   ;;  %s712_s30 = smul.u32 24, %s428_s9  ;;  %s567_s8 = scalar_lea.vmem %s1103_s7, %s713_s6 [#allocation6] }
  0xfc   : > { %s718_s18 = smul.u32 (%p423_p9), 1536, %s926_s15  ;;  %s588_s19 = sshll.u32 (%p423_p9), %s1103_s7, 4  ;;  %s1294_s19 = int_to_ptr.vmem [resolvable:$true] %s588_s19 }
  0xfd   : >> { %s1231_s5 = scalar_lea.vmem [#allocation2], %s712_s30  ;;  %s572_s22 = scalar_lea.sflag (%p423_p9), [#allocation5], %s1092_s11 }
  0xfe   : >> { %v434_v35 = vld [vmem:[%s1231_s5 + $0x8] sm:$0xff]  ;;  %v435_v36 = vld [vmem:[%s1231_s5 + $0x10] sm:$0xff]  ;;  %v433_v37 = vld [vmem:[%s1231_s5] sm:$0xff]  ;;  %s1292_s24 = scalar_lea.hbm (%p423_p9), %s1346_s3, %s718_s18  ;;  %s844_s23 = scalar_lea.vmem (%p423_p9), %s1294_s19, 1536 }
  0xff   : >> { %484 = vmatprep.subr.bf16.mxu0 %v434_v35  ;;  %526 = vmatpush1.bf16.msra.mxu1 %v435_v36  ;;  %v437_v38 = vld [vmem:[%s1231_s5 + $0x20] sm:$0xff]  ;;  %v438_v39 = vld [vmem:[%s1231_s5 + $0x28] sm:$0xff]  ;;  %v436_v40 = vld [vmem:[%s1231_s5 + $0x18] sm:$0xff]  ;;  %p845_p11 = scmp.ne.s32.totalorder (%p423_p9), %s1294_s19, %s844_s23  ;;  %p1354_p0 = scmp.ne.s32.totalorder (%p423_p9), %s1350_s25, 0 }
 0x100   : >> { %485 = vmatpush1.bf16.msra.mxu0 %v433_v37  ;;  %527 = vmatprep.subr.bf16.mxu1 %v956_v34  ;;  %v440_v41 = vld [vmem:[%s1231_s5 + $0x38] sm:$0xff]  ;;  %v441_v42 = vld [vmem:[%s1231_s5 + $0x40] sm:$0xff]  ;;  %v439_v43 = vld [vmem:[%s1231_s5 + $0x30] sm:$0xff]  ;;  %s957_s28 = smov (%p423_p9), [#allocation6]  }
 0x101   : >> { %486 = vmatprep.subr.bf16.mxu0 %v437_v38  ;;  %v443_v44 = vld [vmem:[%s1231_s5 + $0x50] sm:$0xff]  ;;  %v444_v45 = vld [vmem:[%s1231_s5 + $0x58] sm:$0xff]  ;;  %v442_v46 = vld [vmem:[%s1231_s5 + $0x48] sm:$0xff]  ;;  %p846_p5 = pnand (%p423_p9), %p845_p11, %p1354_p0  ;;  %s848_s29 = sshll.u32 (%p423_p9), %s957_s28, 4  ;;  %s849_s29 = int_to_ptr.vmem [resolvable:$false] %s848_s29 }
 0x102   : >> { %v446_v47 = vld [vmem:[%s1231_s5 + $0x68] sm:$0xff]  ;;  %v447_v48 = vld [vmem:[%s1231_s5 + $0x70] sm:$0xff]  ;;  %v445_v49 = vld [vmem:[%s1231_s5 + $0x60] sm:$0xff]  ;;  %s850_s15 = scalar_lea.vmem (%p423_p9), %s849_s29, 3072  ;;  %p851_p2 = scmp.lt.s32.totalorder (%p423_p9), %s1294_s19, %s849_s29 }
 0x103   : >> { %528 = vmatpush1.bf16.msra.mxu1 %v438_v39  ;;  %v449_v50 = vld [vmem:[%s1231_s5 + $0x80] sm:$0xff]  ;;  %v450_v51 = vld [vmem:[%s1231_s5 + $0x88] sm:$0xff]  ;;  %v448_v52 = vld [vmem:[%s1231_s5 + $0x78] sm:$0xff]  ;;  %p847_p13 = pneg (%p423_p9), %p846_p5  ;;  %p852_p4 = scmp.lt.s32.totalorder (%p423_p9), %s850_s15, %s844_s23 }
 0x104   : >> { %487 = vmatpush1.bf16.msra.mxu0 %v436_v40  ;;  %529 = vmatprep.subr.bf16.mxu1 %v956_v34  ;;  %v452_v53 = vld [vmem:[%s1231_s5 + $0x98] sm:$0xff]  ;;  %v453_v54 = vld [vmem:[%s1231_s5 + $0xa0] sm:$0xff]  ;;  %v451_v55 = vld [vmem:[%s1231_s5 + $0x90] sm:$0xff] }
 0x105   : >> { %488 = vmatprep.subr.bf16.mxu0 %v440_v41  ;;  %v455_v56 = vld [vmem:[%s1231_s5 + $0xb0] sm:$0xff]  ;;  %v456_v57 = vld [vmem:[%s1231_s5 + $0xb8] sm:$0xff]  ;;  %v454_v58 = vld [vmem:[%s1231_s5 + $0xa8] sm:$0xff]  ;;  %p853_p6 = por (%p423_p9), %p852_p4, %p851_p2 }
 0x106   : >> { %v458_v59 = vld [vmem:[%s1231_s5 + $0xc8] sm:$0xff]  ;;  %v459_v60 = vld [vmem:[%s1231_s5 + $0xd0] sm:$0xff]  ;;  %v457_v61 = vld [vmem:[%s1231_s5 + $0xc0] sm:$0xff] }
 0x107   : >> { %530 = vmatpush1.bf16.msra.mxu1 %v441_v42  ;;  %v461_v62 = vld [vmem:[%s1231_s5 + $0xe0] sm:$0xff]  ;;  %v462_v63 = vld [vmem:[%s1231_s5 + $0xe8] sm:$0xff]  ;;  %v460_v0 = vld [vmem:[%s1231_s5 + $0xd8] sm:$0xff]  ;;  %p854_p7 = pnand (%p423_p9), %p853_p6, %p847_p13 }
 0x108   : >> { %489 = vmatpush1.bf16.msra.mxu0 %v439_v43  ;;  %531 = vmatprep.subr.bf16.mxu1 %v956_v34  ;;  %v464_v1 = vld [vmem:[%s1231_s5 + $0xf8] sm:$0xff]  ;;  %v465_v2 = vld [vmem:[%s1231_s5 + $0x100] sm:$0xff]  ;;  %v463_v3 = vld [vmem:[%s1231_s5 + $0xf0] sm:$0xff] }
 0x109   : >> { %490 = vmatprep.subr.bf16.mxu0 %v443_v44  ;;  %v467_v4 = vld [vmem:[%s1231_s5 + $0x110] sm:$0xff]  ;;  %v468_v5 = vld [vmem:[%s1231_s5 + $0x118] sm:$0xff]  ;;  %v466_v6 = vld [vmem:[%s1231_s5 + $0x108] sm:$0xff] }
 0x10b   : >> { %532 = vmatpush1.bf16.msra.mxu1 %v444_v45 }
 0x10c   : >> { %491 = vmatpush1.bf16.msra.mxu0 %v442_v46  ;;  %533 = vmatprep.subr.bf16.mxu1 %v956_v34 }
 0x10d   : >> { %492 = vmatprep.subr.bf16.mxu0 %v446_v47 }
 0x10f   : >> { %534 = vmatpush1.bf16.msra.mxu1 %v447_v48 }
 0x110   : >> { %493 = vmatpush1.bf16.msra.mxu0 %v445_v49  ;;  %535 = vmatprep.subr.bf16.mxu1 %v956_v34 }
 0x111   : >> { %494 = vmatprep.subr.bf16.mxu0 %v449_v50 }
 0x113   : >> { %536 = vmatpush1.bf16.msra.mxu1 %v450_v51 }
 0x114   : >> { %495 = vmatpush1.bf16.msra.mxu0 %v448_v52  ;;  %537 = vmatprep.subr.bf16.mxu1 %v956_v34 }
 0x115   : >> { %496 = vmatprep.subr.bf16.mxu0 %v452_v53 }
 0x117   : >> { %538 = vmatpush1.bf16.msra.mxu1 %v453_v54 }
 0x118   : >> { %497 = vmatpush1.bf16.msra.mxu0 %v451_v55  ;;  %539 = vmatprep.subr.bf16.mxu1 %v956_v34 }
 0x119   : >> { %498 = vmatprep.subr.bf16.mxu0 %v455_v56 }
 0x11b   : >> { %540 = vmatpush1.bf16.msra.mxu1 %v456_v57 }
 0x11c   : >> { %499 = vmatpush1.bf16.msra.mxu0 %v454_v58  ;;  %541 = vmatprep.subr.bf16.mxu1 %v956_v34 }
 0x11d   : >> { %500 = vmatprep.subr.bf16.mxu0 %v458_v59 }
 0x11f   : >> { %542 = vmatpush1.bf16.msra.mxu1 %v459_v60 }
 0x120   : >> { %501 = vmatpush1.bf16.msra.mxu0 %v457_v61  ;;  %543 = vmatprep.subr.bf16.mxu1 %v956_v34 }
 0x121   : >> { %502 = vmatprep.subr.bf16.mxu0 %v461_v62 }
 0x123   : >> { %544 = vmatpush1.bf16.msra.mxu1 %v462_v63 }
 0x124   : >> { %503 = vmatpush1.bf16.msra.mxu0 %v460_v0  ;;  %545 = vmatprep.subr.bf16.mxu1 %v956_v34 }
 0x125   : >> { %504 = vmatprep.subr.bf16.mxu0 %v464_v1 }
 0x127   : >> { %546 = vmatpush1.bf16.msra.mxu1 %v465_v2 }
 0x128   : >> { %505 = vmatpush1.bf16.msra.mxu0 %v463_v3  ;;  %547 = vmatprep.subr.bf16.mxu1 %v956_v34 }
 0x129   : >> { %506 = vmatprep.subr.bf16.mxu0 %v467_v4 }
 0x12b   : >> { %548 = vmatpush1.bf16.msra.mxu1 %v468_v5 }
 0x12c   : >> { %507 = vmatpush1.bf16.msra.mxu0 %v466_v6 }
 0x12e   : >> { %558 = vmatmul.mubr.bf16.vlgmr.msra.gmra.mrb[0].mxu1 %v702_v7 }
 0x12f   : >> { %517 = vmatmul.mubr.bf16.vlgmr.msra.gmra.mrb[0].mxu0 %v702_v7 }
 0x17a   : >> { %v472_v8 = vpop.permute.xlu0 %471 }
 0x200   : > { %425 = sbr.rel (!%p423_p9) target bundleno = 248 (0xf8), region = 106 }
 0x201   : >> { %v559_v9 = vpop.f32.mrb[0].mxu1 }
 0x202   : >> { %v560_v10 = vadd.f32 %v559_v9, %v472_v8  ;;  %v518_v11 = vpop.f32.mrb[0].mxu0  ;;  %v561_v12 = vpop.f32.mrb[1].mxu1 }
 0x203   : >> { %v519_v13 = vadd.f32 %v518_v11, %v472_v8  ;;  %v520_v14 = vpop.f32.mrb[1].mxu0  ;;  %v562_v15 = vpop.f32.mrb[2].mxu1 }
 0x204   : >> { %570 = vst [vmem:[%s567_s8 + $0x10] sm:$0xff] %v560_v10  ;;  %v521_v16 = vadd.f32 %v520_v14, %v472_v8  ;;  %v522_v17 = vpop.f32.mrb[2].mxu0  ;;  %v563_v18 = vpop.f32.mrb[3].mxu1 }
 0x205   : >> { %568 = vst [vmem:[%s567_s8] sm:$0xff] %v519_v13  ;;  %v523_v19 = vpop.f32.mrb[3].mxu0 }
 0x206   : >> { %569 = vst [vmem:[%s567_s8 + $0x8] sm:$0xff] %v521_v16 }
 0x207   : > { %857 = shalt.err (!%p854_p7)
}
 0x208   : > { %s858_s7 = scalar_lea.hbm %s1292_s24, 1536  ;;  %s862_s30 = scalar_lea.hbm %s1346_s3, 3072 }
 0x209   : > { %p859_p10 = scmp.ne.s32.totalorder %s1292_s24, %s858_s7  ;;  %p863_p3 = scmp.lt.u32.totalorder %s1292_s24, %s1346_s3 }
 0x20a   : > { %p864_p8 = scmp.lt.u32.totalorder %s862_s30, %s858_s7  ;;  %p866_p11 = scmp.lt.u32.totalorder %s858_s7, %s1292_s24 }
 0x20b   : > { %p860_p12 = pnand %p859_p10, %p1354_p0 }
 0x20c   : > { %p865_p9 = por %p864_p8, %p863_p3 }
 0x20d   : > { %p861_p1 = pneg %p860_p12 }
 0x20e   : > { %p867_p5 = por %p866_p11, %p865_p9 }
 0x210   : > { %p868_p13 = pnand %p867_p5, %p861_p1 }
 0x212   : > { %871 = shalt.err (!%p868_p13)
}
 0x213   : > { %s958_s8 = smov 384   ;;  %s959_s18 = smov 24  }
 0x214   : > { %721 = dma.vmem_to_hbm [thread:$0]  (%p1354_p0), %s1294_s19, 1536, %s1292_s24, %s572_s22, %s958_s8, %s958_s8, %s959_s18  }
 0x215 PF: > { %s603_s4 = sand.u32 1, %s914_s12   ;;  %p1355_p2 = scmp.ne.s32.totalorder %s1351_s27, 0 }
 0x216   : > { %p1356_p4 = scmp.ge.s32.totalorder %s934_s17, 2  ;;  %s604_s10 = scalar_lea.sflag [#allocation5], %s603_s4 }
 0x218   : > { %p728_p6 = pnand %p1356_p4, %p1355_p2 }
 0x21a   : > { %909 = dma.done.wait (!%p728_p6), %s604_s10, 1536  }
 0x21b   : > { %911 = vsyncadd (!%p728_p6), %s604_s10, 4294965760  ;;  %s19_s17 = sadd.s32 1, %s934_s17   ;;  %s1357_s12 = smov %s918_s13 }
 0x21c   : > { %p16_p7 = scmp.ge.s32.totalorder %s19_s17, 4   ;;  %s1358_s13 = smov %s922_s14 }
 0x21d   : > { %s1359_s14 = smov %s1036_s26  ;;  %s1360_s15 = smov %s930_s16 }
 0x21e   : > { %s1361_s16 = smov %s1363_s20  ;;  %18 = sbr.rel (!%p16_p7) target bundleno = 6 (0x6), region = 117 }
 0x225   :  { %609 = vsyncpa [#allocation4], 1 }
 0x226   :  { %611 = vsyncpa [#allocation4 + $0x1], 1 }
 0x227   :  { %612 = vsyncpa [#allocation5], 1 }
 0x228   :  { %614 = vsyncpa [#allocation5 + $0x1], 1 }

// kernel: tpu_custom_call.1
= control target key start
LH: loop header
LB: loop body
LE: loop exit
PB: predicated region body
PF: predicated region fallthrough
CT: control target
= control target key end

     0   :  { %8 = vsyncpa [#allocation4], 0  ;;  %s1343_s0 = inlined_call_operand.hbm [shape: bf16[2,10,4,422], index: 0, kind: input, shape index: {}]   ;;  %s1344_s1 = inlined_call_operand.vmem [shape: bf16[8,192], index: 1, kind: input, shape index: {}]   ;;  %s1345_s2 = inlined_call_operand.vmem [shape: f32[8,1], index: 2, kind: input, shape index: {}]   ;;  %s1346_s3 = inlined_call_operand.hbm [shape: f32[2,4,8,384], index: 3, kind: output, shape index: {}]  }
   0x1   :  { %10 = vsyncpa [#allocation4 + $0x1], 0 }
   0x2   :  { %11 = vsyncpa [#allocation5], 0 }
   0x3   :  { %13 = vsyncpa [#allocation5 + $0x1], 0  ;;  %s980_s12 = smov 0   ;;  %s982_s13 = smov 0  }
   0x4   :  { %s984_s14 = smov 0   ;;  %s986_s15 = smov 0  }
   0x5   :  { %s988_s16 = smov 0   ;;  %s990_s17 = smov 0  }
   0x6 LB: > { %s692_s18 = sadd.s32 4294967295, %s934_s17   ;;  %s693_s19 = sadd.s32 4294967294, %s934_s17   ;;  %s934_s17 = sphi %s990_s17, %s19_s17   ;;  %s930_s16 = sphi %s988_s16, %s1361_s16   ;;  %s926_s15 = sphi %s986_s15, %s1360_s15   ;;  %s922_s14 = sphi %s984_s14, %s1359_s14   ;;  %s918_s13 = sphi %s982_s13, %s1358_s13   ;;  %s914_s12 = sphi %s980_s12, %s1357_s12  }
   0x7   : > { %s31_s20 = sadd.s32 1, %s930_s16  ;;  %s38_s21 = sadd.s32 1, %s922_s14 }
   0x8   : > { %p33_p0 = scmp.ge.s32.totalorder %s31_s20, 2  ;;  %p45_p1 = scmp.ne.s32.totalorder %s922_s14, %s918_s13 }
   0x9   : > { %p46_p2 = scmp.eq.s32.totalorder %s934_s17, 0  ;;  %p51_p3 = scmp.ne.s32.totalorder %s918_s13, %s914_s12 }
   0xa   : > { %s1363_s20 = smov (%p33_p0, %s31_s20), 0  ;;  %p52_p5 = scmp.eq.s32.totalorder %s692_s18, 0 }
   0xb   : > { %p1021_p4 = por %p46_p2, %p45_p1  ;;  %s35_s23 = ssub.s32 %s930_s16, %s1363_s20 }
   0xc   : > { %p119_p6 = scmp.eq.s32.totalorder %s692_s18, 1  ;;  %p36_p7 = scmp.eq.s32.totalorder %s35_s23, 0 }
   0xd   : > { %p1027_p8 = por %p52_p5, %p51_p3  ;;  %p125_p10 = scmp.eq.s32.totalorder %s693_s19, 1 }
   0xe   : > { %p1031_p9 = por %p119_p6, %p45_p1  ;;  %p731_p13 = scmp.lt.s32.totalorder %s934_s17, 2 }
   0xf   : > { %s1036_s26 = scalar_select %p36_p7, %s922_s14, %s38_s21  }
  0x10   : > { %s1350_s25 = scalar_select %p1031_p9, 1, 0 }
  0x11   : > { %p1038_p11 = por %p125_p10, %p51_p3  ;;  %s151_s28 = sand.u32 1, %s922_s14  }
  0x12   : > { %s714_s29 = smul.u32 80, %s151_s28  ;;  %p1048_p0 = pnand %p731_p13, %p1021_p4 }
  0x13   : > { %s1351_s27 = scalar_select %p1038_p11, 1, 0 }
  0x14   : > { %s715_s30 = smul.u32 1280, %s930_s16  ;;  %s155_s8 = scalar_lea.vmem [#allocation3], %s714_s29 }
  0x15   : > { %s162_s9 = sshll.u32 %s155_s8, 4  ;;  %s1060_s10 = scalar_lea.sflag [#allocation4], %s151_s28  ;;  %s1057_s9 = int_to_ptr.vmem [resolvable:$true] %s162_s9 }
  0x16   : > { %s1055_s7 = scalar_lea.hbm %s1343_s0, %s715_s30  ;;  %p816_p3 = pneg %p1048_p0 }
  0x17   : > { %s814_s11 = scalar_lea.hbm %s1055_s7, 1280  ;;  %s819_s21 = scalar_lea.hbm %s1343_s0, 2560 }
  0x18   : > { %p815_p2 = scmp.ne.s32.totalorder %s1055_s7, %s814_s11  ;;  %p820_p6 = scmp.lt.u32.totalorder %s1055_s7, %s1343_s0 }
  0x19   : > { %p821_p7 = scmp.lt.u32.totalorder %s819_s21, %s814_s11  ;;  %p823_p13 = scmp.lt.u32.totalorder %s814_s11, %s1055_s7 }
  0x1a   : > { %p817_p4 = pnand %p816_p3, %p815_p2 }
  0x1b   : > { %p822_p10 = por %p821_p7, %p820_p6 }
  0x1c   : > { %p818_p5 = pneg %p817_p4 }
  0x1d   : > { %p824_p12 = por %p823_p13, %p822_p10 }
  0x1f   : > { %p825_p1 = pnand %p824_p12, %p818_p5 }
  0x21   : > { %828 = shalt.err (!%p825_p1)
}
  0x22   : > { %s829_s28 = scalar_lea.vmem %s1057_s9, 1280  ;;  %s944_s29 = smov [#allocation3]  }
  0x23   : > { %p830_p2 = scmp.ne.s32.totalorder %s1057_s9, %s829_s28  ;;  %s834_s30 = sshll.u32 %s944_s29, 4  ;;  %s835_s30 = int_to_ptr.vmem [resolvable:$false] %s834_s30 }
  0x24   : > { %s836_s5 = scalar_lea.vmem %s835_s30, 2560  ;;  %p837_p9 = scmp.lt.s32.totalorder %s1057_s9, %s835_s30 }
  0x25   : > { %p832_p4 = pnand %p830_p2, %p816_p3  ;;  %p838_p6 = scmp.lt.s32.totalorder %s836_s5, %s829_s28 }
  0x27   : > { %p833_p11 = pneg %p832_p4  ;;  %p839_p7 = por %p838_p6, %p837_p9 }
  0x29   : > { %p840_p10 = pnand %p839_p7, %p833_p11 }
  0x2b   : > { %843 = shalt.err (!%p840_p10)
}
  0x2c   : > { %s945_s6 = smov 128   ;;  %s946_s8 = smov 8  }
  0x2d   : > { %726 = dma.hbm_to_vmem [thread:$0]  (!%p1048_p0), %s1055_s7, 1280, %s1057_s9, %s1060_s10, %s945_s6, %s945_s6, %s946_s8  }
  0x2e   : > { %p170_p12 = scmp.lt.s32.totalorder %s934_s17, 3  ;;  %p1353_p1 = scmp.ge.s32.totalorder %s934_s17, 1 }
  0x30   : > { %p171_p3 = pnand %p1353_p1, %p170_p12 }
  0x31   : > { %s1092_s11 = sand.u32 (!%p171_p3), 1, %s918_s13  }
  0x32   : > { %174 = sbr.rel (%p171_p3) target bundleno = 533 (0x215), region = 32  ;;  %s177_s19 = scalar_lea.sflag (!%p171_p3), [#allocation4], %s1092_s11 }
  0x33   : > { %s716_s18 = smul.u32 (!%p171_p3), 80, %s1092_s11 }
  0x35   : > { %s1096_s21 = scalar_lea.vmem (!%p171_p3), [#allocation3], %s716_s18 }
  0x39   : > { %905 = dma.done.wait (%p1027_p8), %s177_s19, 1280  }
  0x3a   : > { %907 = vsyncadd (%p1027_p8), %s177_s19, 4294966016  ;;  %s717_s4 = smul.u32 96, %s1092_s11  ;;  %s1105_s9 = smov 0  }
  0x3c   : > { %s1103_s7 = scalar_lea.vmem [#allocation6], %s717_s4 }
  0x3d LB: >> { %v222_v0 = vlaneseq  ;;  %v947_v1 = vmov 1983009808   ;;  %s710_s10 = sshll.u32 %s938_s9, 3  ;;  %s948_s22 = smov 127   ;;  %vm265_vm0 = vcmask 1031168   ;;  %vm251_vm1 = vcmask 1039360   ;;  %s938_s9 = sphi %s1105_s9, %s211_s9  }
  0x3e   : >> { %v220_v2 = vunpack.c.l.s4 %v947_v1  ;;  %s215_s24 = scalar_lea.vmem %s1096_s21, %s710_s10 [#allocation3]  ;;  %s949_s23 = smov 109   ;;  %vm353_vm2 = vcmask 1043456   ;;  %vm278_vm3 = vcmask 900096   ;;  %vm343_vm4 = vcmask 1041408  }
  0x3f   : >> { %v223_v3 = vshrl.u32 %v222_v0, 7  ;;  %v216_v5 = vld [vmem:[%s215_s24] sm:$0xff]  ;;  %s950_s28 = smov 108   ;;  %s951_s29 = smov 126   ;;  %vm360_vm5 = vcmask 1045504   ;;  %vm303_vm6 = vcmask 883712  }
  0x40   : >> { %v221_v4 = vunpack.c.0.s8 %v220_v2  ;;  %v234_v7 = vcombine.low %v216_v5, %v216_v5  ;;  %v218_v10 = vcombine.high %v216_v5, %v216_v5  ;;  %s952_s30 = smov 92   ;;  %s953_s5 = smov 110   ;;  %vm315_vm7 = vcmask 752640  }
  0x41   : >> { %s954_s6 = smov 91   ;;  %s955_s8 = smov 90   ;;  %vm291_vm8 = vcmask 891904   ;;  %vm327_vm9 = vcmask 744448   ;;  %vm339_vm10 = vcmask 736256  }
  0x42   : >> { %v224_v6 = vsub.s32 %v221_v4, %v223_v3  ;;  %s404_s18 = smul.u32 48, %s938_s9  ;;  %s211_s9 = sadd.s32 1, %s938_s9  }
  0x43   : >> { %p208_p8 = scmp.ge.s32.totalorder %s211_s9, 10  }
  0x44   : >> { %v241_v8 = vrot.slane %v234_v7, %v224_v6  ;;  %v1112_v9 = vrot.slane %v216_v5, %v224_v6  ;;  %v1121_v13 = vrot.slane %v218_v10, %v224_v6  ;;  %s405_s19 = sshra.s32 %s404_s18, 4 }
  0x45   : >> { %s711_s4 = smul.u32 24, %s405_s19 }
  0x46   : >> { %243 = vrot.lane.b32.xlu0 %v241_v8, %s948_s22  ;;  %247 = vrot.lane.b32.xlu1 %v1112_v9, %s948_s22  ;;  %v1117_v11 = vcombine.high %v1112_v9, %v1112_v9  ;;  %v242_v12 = vcombine.high %v241_v8, %v241_v8  ;;  %v282_v14 = vcombine.high %v1121_v13, %v1121_v13 }
  0x47   : >> { %v255_v15 = vcombine.low %v1112_v9, %v1112_v9  ;;  %v256_v16 = vcombine.low %v1121_v13, %v1121_v13  ;;  %v269_v17 = vcombine.low %v241_v8, %v241_v8  ;;  %s1157_s10 = scalar_lea.vmem [#allocation2], %s711_s4 }
  0x4a   : >> { %283 = vrot.lane.b32.xlu0 %v1112_v9, %s949_s23  ;;  %249 = vrot.lane.b32.xlu1 %v1117_v11, %s948_s22 }
  0x4e   : >> { %245 = vrot.lane.b32.xlu0 %v242_v12, %s948_s22  ;;  %285 = vrot.lane.b32.xlu1 %v1117_v11, %s949_s23 }
  0x52   : >> { %287 = vrot.lane.b32.xlu0 %v1121_v13, %s949_s23  ;;  %289 = vrot.lane.b32.xlu1 %v282_v14, %s949_s23 }
  0x56   : >> { %295 = vrot.lane.b32.xlu0 %v241_v8, %s950_s28  ;;  %297 = vrot.lane.b32.xlu1 %v242_v12, %s950_s28 }
  0x5a   : >> { %299 = vrot.lane.b32.xlu0 %v1112_v9, %s950_s28  ;;  %301 = vrot.lane.b32.xlu1 %v1117_v11, %s950_s28 }
  0x5e   : >> { %257 = vrot.lane.b32.xlu0 %v255_v15, %s951_s29  ;;  %259 = vrot.lane.b32.xlu1 %v1112_v9, %s951_s29 }
  0x62   : >> { %263 = vrot.lane.b32.xlu1 %v1121_v13, %s951_s29  ;;  %261 = vrot.lane.b32.xlu0 %v256_v16, %s951_s29  ;;  %s1220_s29 = smov (%p208_p8), 0  }
  0x66   : >> { %309 = vrot.lane.b32.xlu1 %v1112_v9, %s952_s30  ;;  %307 = vrot.lane.b32.xlu0 %v255_v15, %s952_s30 }
  0x6a   : >> { %313 = vrot.lane.b32.xlu1 %v1121_v13, %s952_s30  ;;  %311 = vrot.lane.b32.xlu0 %v256_v16, %s952_s30 }
  0x6e   : >> { %272 = vrot.lane.b32.xlu1 %v241_v8, %s953_s5  ;;  %270 = vrot.lane.b32.xlu0 %v269_v17, %s953_s5 }
  0x72   : >> { %276 = vrot.lane.b32.xlu1 %v1112_v9, %s953_s5  ;;  %274 = vrot.lane.b32.xlu0 %v255_v15, %s953_s5 }
  0x76   : >> { %321 = vrot.lane.b32.xlu1 %v241_v8, %s954_s6  ;;  %319 = vrot.lane.b32.xlu0 %v269_v17, %s954_s6 }
  0x7a   : >> { %325 = vrot.lane.b32.xlu1 %v1112_v9, %s954_s6  ;;  %323 = vrot.lane.b32.xlu0 %v255_v15, %s954_s6 }
  0x7e   : >> { %333 = vrot.lane.b32.xlu1 %v1117_v11, %s955_s8  ;;  %331 = vrot.lane.b32.xlu0 %v1112_v9, %s955_s8 }
  0x82   : >> { %337 = vrot.lane.b32.xlu1 %v282_v14, %s955_s8  ;;  %335 = vrot.lane.b32.xlu0 %v1121_v13, %s955_s8 }
  0xb8   : >> { %v244_v18 = vpop.permute.xlu0 %243  ;;  %v248_v19 = vpop.permute.xlu1 %247 }
  0xbc   : >> { %v284_v20 = vpop.permute.xlu0 %283  ;;  %v250_v21 = vpop.permute.xlu1 %249 }
  0xbd   : >> { %v254_v43 = vsel %vm251_vm1, %v248_v19, %v250_v21 }
  0xbe   : >> { %v352_v50 = vsel %vm343_vm4, %v1121_v13, %v254_v43 }
  0xc0   : >> { %v246_v22 = vpop.permute.xlu0 %245  ;;  %v1142_v23 = vpop.permute.xlu1 %285 }
  0xc1   : >> { %v252_v38 = vsel %vm251_vm1, %v244_v18, %v246_v22  ;;  %v253_v44 = vsel %vm251_vm1, %v246_v22, %v248_v19  ;;  %v292_v62 = vsel %vm291_vm8, %v284_v20, %v1142_v23 }
  0xc2   : >> { %v346_v40 = vsel %vm343_vm4, %v1112_v9, %v252_v38  ;;  %v349_v51 = vsel %vm343_vm4, %v1117_v11, %v253_v44 }
  0xc4   : >> { %v1144_v24 = vpop.permute.xlu0 %287  ;;  %v1146_v25 = vpop.permute.xlu1 %289 }
  0xc5   : >> { %v293_v9 = vsel %vm291_vm8, %v1142_v23, %v1144_v24  ;;  %v294_v10 = vsel %vm291_vm8, %v1144_v24, %v1146_v25 }
  0xc8   : >> { %v296_v26 = vpop.permute.xlu0 %295  ;;  %v298_v27 = vpop.permute.xlu1 %297 }
  0xc9   : >> { %v304_v52 = vsel %vm303_vm6, %v296_v26, %v298_v27 }
  0xca   : >> { %v372_v63 = vsel %vm343_vm4, %v292_v62, %v304_v52 }
  0xcc   : >> { %v300_v28 = vpop.permute.xlu0 %299  ;;  %v302_v29 = vpop.permute.xlu1 %301 }
  0xcd   : >> { %v305_v2 = vsel %vm303_vm6, %v298_v27, %v300_v28  ;;  %v306_v3 = vsel %vm303_vm6, %v300_v28, %v302_v29 }
  0xce   : >> { %v375_v11 = vsel %vm343_vm4, %v293_v9, %v305_v2  ;;  %v378_v12 = vsel %vm343_vm4, %v294_v10, %v306_v3 }
  0xd0   : >> { %v258_v30 = vpop.permute.xlu0 %257  ;;  %v260_v31 = vpop.permute.xlu1 %259 }
  0xd1   : >> { %v266_v39 = vsel %vm265_vm0, %v258_v30, %v260_v31 }
  0xd2   : >> { %v355_v45 = vsel %vm353_vm2, %v346_v40, %v266_v39 }
  0xd4   : >> { %v264_v32 = vpop.permute.xlu1 %263  ;;  %v262_v33 = vpop.permute.xlu0 %261 }
  0xd5   : >> { %v267_v47 = vsel %vm265_vm0, %v260_v31, %v262_v33  ;;  %v268_v48 = vsel %vm265_vm0, %v262_v33, %v264_v32  ;;  %v1213_v31 = vld [vmem:[%s1344_s1] sm:$0xff] (%p208_p8) }
  0xd6   : >> { %v357_v55 = vsel %vm353_vm2, %v349_v51, %v267_v47  ;;  %v359_v56 = vsel %vm353_vm2, %v352_v50, %v268_v48  ;;  %v1218_v32 = vld [vmem:[%s1345_s2] sm:$0xff] (%p208_p8) }
  0xd8   : >> { %v310_v34 = vpop.permute.xlu1 %309  ;;  %v308_v35 = vpop.permute.xlu0 %307 }
  0xd9   : >> { %v316_v59 = vsel %vm315_vm7, %v308_v35, %v310_v34 }
  0xda   : >> { %v380_v4 = vsel %vm353_vm2, %v372_v63, %v316_v59 }
  0xdc   : >> { %v314_v36 = vpop.permute.xlu1 %313  ;;  %v312_v37 = vpop.permute.xlu0 %311 }
  0xdd   : >> { %v317_v6 = vsel %vm315_vm7, %v310_v34, %v312_v37  ;;  %v318_v7 = vsel %vm315_vm7, %v312_v37, %v314_v36 }
  0xde   : >> { %v382_v15 = vsel %vm353_vm2, %v375_v11, %v317_v6  ;;  %v384_v16 = vsel %vm353_vm2, %v378_v12, %v318_v7 }
  0xe0   : >> { %v273_v41 = vpop.permute.xlu1 %272  ;;  %v271_v42 = vpop.permute.xlu0 %270 }
  0xe1   : >> { %v279_v46 = vsel %vm278_vm3, %v271_v42, %v273_v41 }
  0xe2   : >> { %v362_v49 = vsel %vm360_vm5, %v355_v45, %v279_v46 }
  0xe3   : >> { %410 = vst [vmem:[%s1157_s10] sm:$0xff] %v362_v49 }
  0xe4   : >> { %v277_v53 = vpop.permute.xlu1 %276  ;;  %v275_v54 = vpop.permute.xlu0 %274 }
  0xe5   : >> { %v280_v57 = vsel %vm278_vm3, %v273_v41, %v275_v54  ;;  %v281_v58 = vsel %vm278_vm3, %v275_v54, %v277_v53 }
  0xe6   : >> { %v365_v60 = vsel %vm360_vm5, %v357_v55, %v280_v57  ;;  %v368_v61 = vsel %vm360_vm5, %v359_v56, %v281_v58 }
  0xe7   : >> { %411 = vst [vmem:[%s1157_s10 + $0x8] sm:$0xff] %v365_v60  ;;  %412 = vst [vmem:[%s1157_s10 + $0x10] sm:$0xff] %v368_v61 }
  0xe8   : >> { %v322_v0 = vpop.permute.xlu1 %321  ;;  %v320_v1 = vpop.permute.xlu0 %319 }
  0xe9   : >> { %v328_v5 = vsel %vm327_vm9, %v320_v1, %v322_v0 }
  0xea   : >> { %v386_v8 = vsel %vm360_vm5, %v380_v4, %v328_v5 }
  0xeb   : >> { %413 = vst [vmem:[%s1157_s10 + $0x18] sm:$0xff] %v386_v8 }
  0xec   : >> { %v326_v13 = vpop.permute.xlu1 %325  ;;  %v324_v14 = vpop.permute.xlu0 %323 }
  0xed   : >> { %v329_v17 = vsel %vm327_vm9, %v322_v0, %v324_v14  ;;  %v330_v18 = vsel %vm327_vm9, %v324_v14, %v326_v13 }
  0xee   : >> { %v389_v19 = vsel %vm360_vm5, %v382_v15, %v329_v17  ;;  %v392_v20 = vsel %vm360_vm5, %v384_v16, %v330_v18 }
  0xef   : >> { %414 = vst [vmem:[%s1157_s10 + $0x20] sm:$0xff] %v389_v19  ;;  %415 = vst [vmem:[%s1157_s10 + $0x28] sm:$0xff] %v392_v20 }
  0xf0   : >> { %v334_v21 = vpop.permute.xlu1 %333  ;;  %v332_v22 = vpop.permute.xlu0 %331 }
  0xf1   : >> { %v340_v23 = vsel %vm339_vm10, %v332_v22, %v334_v21  ;;  %210 = sbr.rel (!%p208_p8) target bundleno = 61 (0x3d), region = 95 }
  0xf2   : >> { %v396_v24 = vsel %vm343_vm4, %v340_v23, 0 }
  0xf3   : >> { %416 = vst [vmem:[%s1157_s10 + $0x30] sm:$0xff] %v396_v24 }
  0xf4   : >> { %v338_v25 = vpop.permute.xlu1 %337  ;;  %v336_v26 = vpop.permute.xlu0 %335 }
  0xf5   : >> { %v341_v27 = vsel %vm339_vm10, %v334_v21, %v336_v26  ;;  %v342_v28 = vsel %vm339_vm10, %v336_v26, %v338_v25 }
  0xf6   : >> { %v399_v29 = vsel %vm343_vm4, %v341_v27, 0  ;;  %v402_v30 = vsel %vm343_vm4, %v342_v28, 0 }
  0xf7   : >> { %417 = vst [vmem:[%s1157_s10 + $0x38] sm:$0xff] %v399_v29  ;;  %418 = vst [vmem:[%s1157_s10 + $0x40] sm:$0xff] %v402_v30 }
  0xf8 LB: >> { %v703_v33 = vcombine.high %v1213_v31, %v1213_v31  ;;  %vm480_vm11 = vcmask 523264   ;;  %v956_v34 = vmov 0   ;;  %s427_s21 = smul.u32 96, %s942_s29  ;;  %v702_v7 = vcombine.low %v1213_v31, %v1213_v31  ;;  %s942_s29 = sphi %s1220_s29, %s426_s29  }
  0xf9   : >> { %525 = vmatprep.subr.bf16.mxu1 %v956_v34  ;;  %813 = vset.pattern.permute.xlu0 %v956_v34  ;;  %s713_s6 = smul.u32 24, %s942_s29  ;;  %s426_s29 = sadd.s32 1, %s942_s29  }
  0xfa   : >> { %705 = vmatprep.mubr.msk.bf16.mxu1 %vm480_vm11, %v703_v33  ;;  %704 = vmatprep.mubr.msk.bf16.mxu0 %vm480_vm11, %v703_v33  ;;  %s428_s9 = sshra.s32 %s427_s21, 4  ;;  %p423_p9 = scmp.ge.s32.totalorder %s426_s29, 4  }
  0xfb   : >> { %471 = vperm.xlu0 %813, %v1218_v32   ;;  %s712_s30 = smul.u32 24, %s428_s9  ;;  %s567_s8 = scalar_lea.vmem %s1103_s7, %s713_s6 [#allocation6] }
  0xfc   : > { %s718_s18 = smul.u32 (%p423_p9), 1536, %s926_s15  ;;  %s588_s19 = sshll.u32 (%p423_p9), %s1103_s7, 4  ;;  %s1294_s19 = int_to_ptr.vmem [resolvable:$true] %s588_s19 }
  0xfd   : >> { %s1231_s5 = scalar_lea.vmem [#allocation2], %s712_s30  ;;  %s572_s22 = scalar_lea.sflag (%p423_p9), [#allocation5], %s1092_s11 }
  0xfe   : >> { %v434_v35 = vld [vmem:[%s1231_s5 + $0x8] sm:$0xff]  ;;  %v435_v36 = vld [vmem:[%s1231_s5 + $0x10] sm:$0xff]  ;;  %v433_v37 = vld [vmem:[%s1231_s5] sm:$0xff]  ;;  %s1292_s24 = scalar_lea.hbm (%p423_p9), %s1346_s3, %s718_s18  ;;  %s844_s23 = scalar_lea.vmem (%p423_p9), %s1294_s19, 1536 }
  0xff   : >> { %484 = vmatprep.subr.bf16.mxu0 %v434_v35  ;;  %526 = vmatpush1.bf16.msra.mxu1 %v435_v36  ;;  %v437_v38 = vld [vmem:[%s1231_s5 + $0x20] sm:$0xff]  ;;  %v438_v39 = vld [vmem:[%s1231_s5 + $0x28] sm:$0xff]  ;;  %v436_v40 = vld [vmem:[%s1231_s5 + $0x18] sm:$0xff]  ;;  %p845_p11 = scmp.ne.s32.totalorder (%p423_p9), %s1294_s19, %s844_s23  ;;  %p1354_p0 = scmp.ne.s32.totalorder (%p423_p9), %s1350_s25, 0 }
 0x100   : >> { %485 = vmatpush1.bf16.msra.mxu0 %v433_v37  ;;  %527 = vmatprep.subr.bf16.mxu1 %v956_v34  ;;  %v440_v41 = vld [vmem:[%s1231_s5 + $0x38] sm:$0xff]  ;;  %v441_v42 = vld [vmem:[%s1231_s5 + $0x40] sm:$0xff]  ;;  %v439_v43 = vld [vmem:[%s1231_s5 + $0x30] sm:$0xff]  ;;  %s957_s28 = smov (%p423_p9), [#allocation6]  }
 0x101   : >> { %486 = vmatprep.subr.bf16.mxu0 %v437_v38  ;;  %v443_v44 = vld [vmem:[%s1231_s5 + $0x50] sm:$0xff]  ;;  %v444_v45 = vld [vmem:[%s1231_s5 + $0x58] sm:$0xff]  ;;  %v442_v46 = vld [vmem:[%s1231_s5 + $0x48] sm:$0xff]  ;;  %p846_p5 = pnand (%p423_p9), %p845_p11, %p1354_p0  ;;  %s848_s29 = sshll.u32 (%p423_p9), %s957_s28, 4  ;;  %s849_s29 = int_to_ptr.vmem [resolvable:$false] %s848_s29 }
 0x102   : >> { %v446_v47 = vld [vmem:[%s1231_s5 + $0x68] sm:$0xff]  ;;  %v447_v48 = vld [vmem:[%s1231_s5 + $0x70] sm:$0xff]  ;;  %v445_v49 = vld [vmem:[%s1231_s5 + $0x60] sm:$0xff]  ;;  %s850_s15 = scalar_lea.vmem (%p423_p9), %s849_s29, 3072  ;;  %p851_p2 = scmp.lt.s32.totalorder (%p423_p9), %s1294_s19, %s849_s29 }
 0x103   : >> { %528 = vmatpush1.bf16.msra.mxu1 %v438_v39  ;;  %v449_v50 = vld [vmem:[%s1231_s5 + $0x80] sm:$0xff]  ;;  %v450_v51 = vld [vmem:[%s1231_s5 + $0x88] sm:$0xff]  ;;  %v448_v52 = vld [vmem:[%s1231_s5 + $0x78] sm:$0xff]  ;;  %p847_p13 = pneg (%p423_p9), %p846_p5  ;;  %p852_p4 = scmp.lt.s32.totalorder (%p423_p9), %s850_s15, %s844_s23 }
 0x104   : >> { %487 = vmatpush1.bf16.msra.mxu0 %v436_v40  ;;  %529 = vmatprep.subr.bf16.mxu1 %v956_v34  ;;  %v452_v53 = vld [vmem:[%s1231_s5 + $0x98] sm:$0xff]  ;;  %v453_v54 = vld [vmem:[%s1231_s5 + $0xa0] sm:$0xff]  ;;  %v451_v55 = vld [vmem:[%s1231_s5 + $0x90] sm:$0xff] }
 0x105   : >> { %488 = vmatprep.subr.bf16.mxu0 %v440_v41  ;;  %v455_v56 = vld [vmem:[%s1231_s5 + $0xb0] sm:$0xff]  ;;  %v456_v57 = vld [vmem:[%s1231_s5 + $0xb8] sm:$0xff]  ;;  %v454_v58 = vld [vmem:[%s1231_s5 + $0xa8] sm:$0xff]  ;;  %p853_p6 = por (%p423_p9), %p852_p4, %p851_p2 }
 0x106   : >> { %v458_v59 = vld [vmem:[%s1231_s5 + $0xc8] sm:$0xff]  ;;  %v459_v60 = vld [vmem:[%s1231_s5 + $0xd0] sm:$0xff]  ;;  %v457_v61 = vld [vmem:[%s1231_s5 + $0xc0] sm:$0xff] }
 0x107   : >> { %530 = vmatpush1.bf16.msra.mxu1 %v441_v42  ;;  %v461_v62 = vld [vmem:[%s1231_s5 + $0xe0] sm:$0xff]  ;;  %v462_v63 = vld [vmem:[%s1231_s5 + $0xe8] sm:$0xff]  ;;  %v460_v0 = vld [vmem:[%s1231_s5 + $0xd8] sm:$0xff]  ;;  %p854_p7 = pnand (%p423_p9), %p853_p6, %p847_p13 }
 0x108   : >> { %489 = vmatpush1.bf16.msra.mxu0 %v439_v43  ;;  %531 = vmatprep.subr.bf16.mxu1 %v956_v34  ;;  %v464_v1 = vld [vmem:[%s1231_s5 + $0xf8] sm:$0xff]  ;;  %v465_v2 = vld [vmem:[%s1231_s5 + $0x100] sm:$0xff]  ;;  %v463_v3 = vld [vmem:[%s1231_s5 + $0xf0] sm:$0xff] }
 0x109   : >> { %490 = vmatprep.subr.bf16.mxu0 %v443_v44  ;;  %v467_v4 = vld [vmem:[%s1231_s5 + $0x110] sm:$0xff]  ;;  %v468_v5 = vld [vmem:[%s1231_s5 + $0x118] sm:$0xff]  ;;  %v466_v6 = vld [vmem:[%s1231_s5 + $0x108] sm:$0xff] }
 0x10b   : >> { %532 = vmatpush1.bf16.msra.mxu1 %v444_v45 }
 0x10c   : >> { %491 = vmatpush1.bf16.msra.mxu0 %v442_v46  ;;  %533 = vmatprep.subr.bf16.mxu1 %v956_v34 }
 0x10d   : >> { %492 = vmatprep.subr.bf16.mxu0 %v446_v47 }
 0x10f   : >> { %534 = vmatpush1.bf16.msra.mxu1 %v447_v48 }
 0x110   : >> { %493 = vmatpush1.bf16.msra.mxu0 %v445_v49  ;;  %535 = vmatprep.subr.bf16.mxu1 %v956_v34 }
 0x111   : >> { %494 = vmatprep.subr.bf16.mxu0 %v449_v50 }
 0x113   : >> { %536 = vmatpush1.bf16.msra.mxu1 %v450_v51 }
 0x114   : >> { %495 = vmatpush1.bf16.msra.mxu0 %v448_v52  ;;  %537 = vmatprep.subr.bf16.mxu1 %v956_v34 }
 0x115   : >> { %496 = vmatprep.subr.bf16.mxu0 %v452_v53 }
 0x117   : >> { %538 = vmatpush1.bf16.msra.mxu1 %v453_v54 }
 0x118   : >> { %497 = vmatpush1.bf16.msra.mxu0 %v451_v55  ;;  %539 = vmatprep.subr.bf16.mxu1 %v956_v34 }
 0x119   : >> { %498 = vmatprep.subr.bf16.mxu0 %v455_v56 }
 0x11b   : >> { %540 = vmatpush1.bf16.msra.mxu1 %v456_v57 }
 0x11c   : >> { %499 = vmatpush1.bf16.msra.mxu0 %v454_v58  ;;  %541 = vmatprep.subr.bf16.mxu1 %v956_v34 }
 0x11d   : >> { %500 = vmatprep.subr.bf16.mxu0 %v458_v59 }
 0x11f   : >> { %542 = vmatpush1.bf16.msra.mxu1 %v459_v60 }
 0x120   : >> { %501 = vmatpush1.bf16.msra.mxu0 %v457_v61  ;;  %543 = vmatprep.subr.bf16.mxu1 %v956_v34 }
 0x121   : >> { %502 = vmatprep.subr.bf16.mxu0 %v461_v62 }
 0x123   : >> { %544 = vmatpush1.bf16.msra.mxu1 %v462_v63 }
 0x124   : >> { %503 = vmatpush1.bf16.msra.mxu0 %v460_v0  ;;  %545 = vmatprep.subr.bf16.mxu1 %v956_v34 }
 0x125   : >> { %504 = vmatprep.subr.bf16.mxu0 %v464_v1 }
 0x127   : >> { %546 = vmatpush1.bf16.msra.mxu1 %v465_v2 }
 0x128   : >> { %505 = vmatpush1.bf16.msra.mxu0 %v463_v3  ;;  %547 = vmatprep.subr.bf16.mxu1 %v956_v34 }
 0x129   : >> { %506 = vmatprep.subr.bf16.mxu0 %v467_v4 }
 0x12b   : >> { %548 = vmatpush1.bf16.msra.mxu1 %v468_v5 }
 0x12c   : >> { %507 = vmatpush1.bf16.msra.mxu0 %v466_v6 }
 0x12e   : >> { %558 = vmatmul.mubr.bf16.vlgmr.msra.gmra.mrb[0].mxu1 %v702_v7 }
 0x12f   : >> { %517 = vmatmul.mubr.bf16.vlgmr.msra.gmra.mrb[0].mxu0 %v702_v7 }
 0x17a   : >> { %v472_v8 = vpop.permute.xlu0 %471 }
 0x200   : > { %425 = sbr.rel (!%p423_p9) target bundleno = 248 (0xf8), region = 106 }
 0x201   : >> { %v559_v9 = vpop.f32.mrb[0].mxu1 }
 0x202   : >> { %v560_v10 = vadd.f32 %v559_v9, %v472_v8  ;;  %v518_v11 = vpop.f32.mrb[0].mxu0  ;;  %v561_v12 = vpop.f32.mrb[1].mxu1 }
 0x203   : >> { %v519_v13 = vadd.f32 %v518_v11, %v472_v8  ;;  %v520_v14 = vpop.f32.mrb[1].mxu0  ;;  %v562_v15 = vpop.f32.mrb[2].mxu1 }
 0x204   : >> { %570 = vst [vmem:[%s567_s8 + $0x10] sm:$0xff] %v560_v10  ;;  %v521_v16 = vadd.f32 %v520_v14, %v472_v8  ;;  %v522_v17 = vpop.f32.mrb[2].mxu0  ;;  %v563_v18 = vpop.f32.mrb[3].mxu1 }
 0x205   : >> { %568 = vst [vmem:[%s567_s8] sm:$0xff] %v519_v13  ;;  %v523_v19 = vpop.f32.mrb[3].mxu0 }
 0x206   : >> { %569 = vst [vmem:[%s567_s8 + $0x8] sm:$0xff] %v521_v16 }
 0x207   : > { %857 = shalt.err (!%p854_p7)
}
 0x208   : > { %s858_s7 = scalar_lea.hbm %s1292_s24, 1536  ;;  %s862_s30 = scalar_lea.hbm %s1346_s3, 3072 }
 0x209   : > { %p859_p10 = scmp.ne.s32.totalorder %s1292_s24, %s858_s7  ;;  %p863_p3 = scmp.lt.u32.totalorder %s1292_s24, %s1346_s3 }
 0x20a   : > { %p864_p8 = scmp.lt.u32.totalorder %s862_s30, %s858_s7  ;;  %p866_p11 = scmp.lt.u32.totalorder %s858_s7, %s1292_s24 }
 0x20b   : > { %p860_p12 = pnand %p859_p10, %p1354_p0 }
 0x20c   : > { %p865_p9 = por %p864_p8, %p863_p3 }
 0x20d   : > { %p861_p1 = pneg %p860_p12 }
 0x20e   : > { %p867_p5 = por %p866_p11, %p865_p9 }
 0x210   : > { %p868_p13 = pnand %p867_p5, %p861_p1 }
 0x212   : > { %871 = shalt.err (!%p868_p13)
}
 0x213   : > { %s958_s8 = smov 384   ;;  %s959_s18 = smov 24  }
 0x214   : > { %721 = dma.vmem_to_hbm [thread:$0]  (%p1354_p0), %s1294_s19, 1536, %s1292_s24, %s572_s22, %s958_s8, %s958_s8, %s959_s18  }
 0x215 PF: > { %s603_s4 = sand.u32 1, %s914_s12   ;;  %p1355_p2 = scmp.ne.s32.totalorder %s1351_s27, 0 }
 0x216   : > { %p1356_p4 = scmp.ge.s32.totalorder %s934_s17, 2  ;;  %s604_s10 = scalar_lea.sflag [#allocation5], %s603_s4 }
 0x218   : > { %p728_p6 = pnand %p1356_p4, %p1355_p2 }
 0x21a   : > { %909 = dma.done.wait (!%p728_p6), %s604_s10, 1536  }
 0x21b   : > { %911 = vsyncadd (!%p728_p6), %s604_s10, 4294965760  ;;  %s19_s17 = sadd.s32 1, %s934_s17   ;;  %s1357_s12 = smov %s918_s13 }
 0x21c   : > { %p16_p7 = scmp.ge.s32.totalorder %s19_s17, 4   ;;  %s1358_s13 = smov %s922_s14 }
 0x21d   : > { %s1359_s14 = smov %s1036_s26  ;;  %s1360_s15 = smov %s930_s16 }
 0x21e   : > { %s1361_s16 = smov %s1363_s20  ;;  %18 = sbr.rel (!%p16_p7) target bundleno = 6 (0x6), region = 117 }
 0x225   :  { %609 = vsyncpa [#allocation4], 1 }
 0x226   :  { %611 = vsyncpa [#allocation4 + $0x1], 1 }
 0x227   :  { %612 = vsyncpa [#allocation5], 1 }
 0x228   :  { %614 = vsyncpa [#allocation5 + $0x1], 1 }

</bundles_post_ra>
